<compile_context>
chip_gen: v7x
topology: tpu7x:2x2x1
jax: 0.10.0
libtpu: 0.0.40
codegen_flags: <defaults>
</compile_context>

<pallas_src>
import functools

import jax
import jax.numpy as jnp
from jax import lax
from jax.experimental import pallas as pl
from jax.experimental.pallas import tpu as pltpu

LANE = 128
SUBLANE = 8


def _round_up(x, m):
    return ((x + m - 1) // m) * m


def _pick_vmem_limit_bytes():
    """Generation-aware scoped-VMEM limit: ~7/8 of physical, capped at 100 MiB."""
    try:
        cap = int(pltpu.get_tpu_info().vmem_capacity_bytes)
    except Exception:
        cap = 64 * 1024 * 1024  # conservative (v7x-sized) fallback
    return int(min(100 * 2 ** 20, cap * 7 // 8))


def _mha_kernel(x_ref, wq_ref, bq_ref, wk_ref, bk_ref, wv_ref, bv_ref,
                wo_ref, bo_ref, o_ref, k_scr, v_scr, ctx_scr,
                *, num_heads, d_k, tq, s_real):
    qi = pl.program_id(1)
    dtype = x_ref.dtype
    scale = 1.0 / (d_k ** 0.5)
    s_pad = k_scr.shape[0]

    # ---- K/V projections: once per batch element, cached in VMEM scratch ----
    @pl.when(qi == 0)
    def _():
        x_all = x_ref[0]                                           # (S_pad, d_in_p)
        k = jnp.dot(x_all, wk_ref[...],
                    preferred_element_type=jnp.float32) + bk_ref[...]
        v = jnp.dot(x_all, wv_ref[...],
                    preferred_element_type=jnp.float32) + bv_ref[...]
        k_scr[...] = k.astype(dtype)                               # (S_pad, D)
        v_scr[...] = v.astype(dtype)

    # ---- Q projection for this q tile (1/sqrt(d_k) folded into Q) ----
    q_start = pl.multiple_of(qi * tq, tq)
    xq = x_ref[0, pl.ds(q_start, tq), :]                           # (tq, d_in_p)
    q = (jnp.dot(xq, wq_ref[...], preferred_element_type=jnp.float32)
         + bq_ref[...]) * scale
    q = q.astype(dtype)                                            # (tq, D)

    k = k_scr[...]                                                 # (S_pad, D)
    v = v_scr[...]                                                 # (S_pad, D)

    # Padded key rows must not receive softmax mass.
    need_mask = s_pad != s_real
    if need_mask:
        key_mask = lax.broadcasted_iota(jnp.int32, (1, s_pad), 1) < s_real

    # ---- per-head attention; context written straight into the slab --------
    # TODO(synk): lax.fori_loop + head-major scratch for very large H.
    for h in range(num_heads):
        lo = h * d_k
        qh = q[:, lo:lo + d_k]                                     # (tq, d_k)
        kh = k[:, lo:lo + d_k]                                     # (S_pad, d_k)
        vh = v[:, lo:lo + d_k]                                     # (S_pad, d_k)

        s = lax.dot_general(qh, kh, (((1,), (1,)), ((), ())),
                            preferred_element_type=jnp.float32)    # (tq, S_pad)
        if need_mask:
            s = jnp.where(key_mask, s, -1e30)
        s = s - jnp.max(s, axis=-1, keepdims=True)
        p = jnp.exp(s)                                             # f32 softmax
        # EUP reciprocal + multiply instead of a VALU divide.  approx=True is
        # the production choice with bf16 outputs; exact keeps this f32 demo
        # tight against the reference.
        p = p * pl.reciprocal(jnp.sum(p, axis=-1, keepdims=True), approx=False)

        ctx_scr[:, lo:lo + d_k] = jnp.dot(
            p.astype(dtype), vh,
            preferred_element_type=jnp.float32).astype(dtype)

    # ---- single full-K output projection + bias (lane-dense store) ---------
    out = jnp.dot(ctx_scr[...], wo_ref[...],
                  preferred_element_type=jnp.float32) + bo_ref[...]
    o_ref[0] = out.astype(o_ref.dtype)


def multi_head_attention(x, params, *, num_heads, q_tile=256, compute_dtype=None):
    """x: (B, S, D). params: weights pre-transposed to (d_in, d_out), biases (D,)."""
    B, S, D = x.shape
    assert D % num_heads == 0, "d_model must be divisible by num_heads"
    d_k = D // num_heads
    dtype = jnp.dtype(compute_dtype) if compute_dtype is not None else x.dtype

    d_in_p = _round_up(D, LANE)          # padded input feature dim (zero cols)
    d_out_p = _round_up(D, LANE)         # lane-dense output dim
    tq = min(q_tile, _round_up(S, SUBLANE))   # q tile (256 default; 128 on v5e)
    s_pad = _round_up(S, tq)             # pad S so n_q = s_pad // tq tiles exactly
    n_q = s_pad // tq

    # ---- wrapper-side zero padding (exact; NO per-head d_k padding) --------
    x_p = jnp.pad(x, ((0, 0), (0, s_pad - S), (0, d_in_p - D))).astype(dtype)

    def prep_in_w(w):                    # (D, D) -> (d_in_p, D); zero rows exact
        return jnp.pad(w, ((0, d_in_p - D), (0, 0))).astype(dtype)

    def prep_b(b):                       # (D,) -> (1, D)
        return b.reshape(1, D).astype(dtype)

    wq_p, bq_p = prep_in_w(params["wq"]), prep_b(params["bq"])
    wk_p, bk_p = prep_in_w(params["wk"]), prep_b(params["bk"])
    wv_p, bv_p = prep_in_w(params["wv"]), prep_b(params["bv"])
    wo_p = jnp.pad(params["wo"], ((0, 0), (0, d_out_p - D))).astype(dtype)
    bo_p = jnp.pad(params["bo"], (0, d_out_p - D)).reshape(1, d_out_p).astype(dtype)

    kernel = functools.partial(_mha_kernel, num_heads=num_heads, d_k=d_k,
                               tq=tq, s_real=S)

    def run(single_buffer_weights):
        wmode = ({"pipeline_mode": pl.Buffered(1)}
                 if single_buffer_weights else {})

        def w_spec(shape):
            return pl.BlockSpec(shape, lambda b, qi: (0, 0), **wmode)

        grid_spec = pltpu.PrefetchScalarGridSpec(
            num_scalar_prefetch=0,
            grid=(B, n_q),
            in_specs=[
                pl.BlockSpec((1, s_pad, d_in_p), lambda b, qi: (b, 0, 0)),  # x
                w_spec((d_in_p, D)), w_spec((1, D)),                        # Wq, bq
                w_spec((d_in_p, D)), w_spec((1, D)),                        # Wk, bk
                w_spec((d_in_p, D)), w_spec((1, D)),                        # Wv, bv
                w_spec((D, d_out_p)), w_spec((1, d_out_p)),                 # Wo, bo
            ],
            out_specs=pl.BlockSpec((1, tq, d_out_p), lambda b, qi: (b, qi, 0)),
            scratch_shapes=[
                pltpu.VMEM((s_pad, D), dtype),   # cached K (per batch element)
                pltpu.VMEM((s_pad, D), dtype),   # cached V
                pltpu.VMEM((tq, D), dtype),      # per-tile context slab
            ],
        )
        return pl.pallas_call(
            kernel,
            out_shape=jax.ShapeDtypeStruct((B, s_pad, d_out_p), dtype),
            grid_spec=grid_spec,
            compiler_params=pltpu.CompilerParams(
                dimension_semantics=("parallel", "arbitrary"),
                vmem_limit_bytes=_pick_vmem_limit_bytes()),
        )(x_p, wq_p, bq_p, wk_p, bk_p, wv_p, bv_p, wo_p, bo_p)

    try:
        out_p = run(single_buffer_weights=True)
    except Exception:
        # Older jaxlibs may reject pl.Buffered(1); retry with default buffering.
        out_p = run(single_buffer_weights=False)

    return out_p[:, :S, :D].astype(x.dtype)


def _reference_mha(x, params, *, num_heads):
    """Pure-JAX reference mirroring the PyTorch forward exactly."""
    B, S, D = x.shape
    d_k = D // num_heads
    q = x @ params["wq"] + params["bq"]
    k = x @ params["wk"] + params["bk"]
    v = x @ params["wv"] + params["bv"]
    q = q.reshape(B, S, num_heads, d_k).transpose(0, 2, 1, 3)
    k = k.reshape(B, S, num_heads, d_k).transpose(0, 2, 1, 3)
    v = v.reshape(B, S, num_heads, d_k).transpose(0, 2, 1, 3)
    scores = jnp.einsum("bhqd,bhkd->bhqk", q, k / (d_k ** 0.5))
    w = jax.nn.softmax(scores, axis=-1)
    attn = jnp.einsum("bhqk,bhkd->bhqd", w, v)
    attn = attn.transpose(0, 2, 1, 3).reshape(B, S, D)
    return attn @ params["wo"] + params["bo"]


if __name__ == "__main__":
    batch_size, seq_len, d_model, num_heads = 2, 5, 12, 3

    key = jax.random.PRNGKey(0)
    kx, kq, kk, kv, ko, kbq, kbk, kbv, kbo = jax.random.split(key, 9)

    x = jax.random.normal(kx, (batch_size, seq_len, d_model), jnp.float32)

    # nn.Linear-style uniform init; weights stored pre-transposed as (d_in, d_out).
    bound = 1.0 / (d_model ** 0.5)

    def uni(k, shape):
        return jax.random.uniform(k, shape, jnp.float32, -bound, bound)

    params = {
        "wq": uni(kq, (d_model, d_model)), "bq": uni(kbq, (d_model,)),
        "wk": uni(kk, (d_model, d_model)), "bk": uni(kbk, (d_model,)),
        "wv": uni(kv, (d_model, d_model)), "bv": uni(kbv, (d_model,)),
        "wo": uni(ko, (d_model, d_model)), "bo": uni(kbo, (d_model,)),
    }

    out = multi_head_attention(x, params, num_heads=num_heads)
    out = jax.block_until_ready(out)

    ref = _reference_mha(x, params, num_heads=num_heads)
    assert out.shape == (batch_size, seq_len, d_model)
    # Tolerance covers possible bf16 multi-pass MXU f32 matmul numerics (both in
    # the kernel and in the XLA reference) while still catching structural bugs.
    assert jnp.allclose(out, ref, atol=5e-3, rtol=5e-3), "mismatch vs reference"

    print("KERNEL_OK")
</pallas_src>

<mosaic_0001>
module attributes {stable_mosaic.version = 11 : i64} {
  func.func @_mha_kernel(%arg0: i32, %arg1: i32, %arg2: memref<1x8x128xf32, #tpu.memory_space<vmem>>, %arg3: memref<128x12xf32, #tpu.memory_space<vmem>>, %arg4: memref<1x12xf32, #tpu.memory_space<vmem>>, %arg5: memref<128x12xf32, #tpu.memory_space<vmem>>, %arg6: memref<1x12xf32, #tpu.memory_space<vmem>>, %arg7: memref<128x12xf32, #tpu.memory_space<vmem>>, %arg8: memref<1x12xf32, #tpu.memory_space<vmem>>, %arg9: memref<12x128xf32, #tpu.memory_space<vmem>>, %arg10: memref<1x128xf32, #tpu.memory_space<vmem>>, %arg11: memref<1x8x128xf32, #tpu.memory_space<vmem>>, %arg12: memref<8x12xf32, #tpu.memory_space<vmem>>, %arg13: memref<8x12xf32, #tpu.memory_space<vmem>>, %arg14: memref<8x12xf32, #tpu.memory_space<vmem>>) attributes {dimension_semantics = [#tpu.dimension_semantics<parallel>, #tpu.dimension_semantics<arbitrary>], iteration_bounds = array<i64: 2, 1>, scalar_prefetch = 0 : i64, scratch_operands = 3 : i64, tpu.core_type = #tpu.core_type<tc>, window_params = [{transform_indices = @transform_0, window_bounds = array<i64: 1, 8, 128>}, {pipeline_mode = #tpu.pipeline_mode<synchronous>, transform_indices = @transform_1, window_bounds = array<i64: 128, 12>}, {pipeline_mode = #tpu.pipeline_mode<synchronous>, transform_indices = @transform_2, window_bounds = array<i64: 1, 12>}, {pipeline_mode = #tpu.pipeline_mode<synchronous>, transform_indices = @transform_3, window_bounds = array<i64: 128, 12>}, {pipeline_mode = #tpu.pipeline_mode<synchronous>, transform_indices = @transform_4, window_bounds = array<i64: 1, 12>}, {pipeline_mode = #tpu.pipeline_mode<synchronous>, transform_indices = @transform_5, window_bounds = array<i64: 128, 12>}, {pipeline_mode = #tpu.pipeline_mode<synchronous>, transform_indices = @transform_6, window_bounds = array<i64: 1, 12>}, {pipeline_mode = #tpu.pipeline_mode<synchronous>, transform_indices = @transform_7, window_bounds = array<i64: 12, 128>}, {pipeline_mode = #tpu.pipeline_mode<synchronous>, transform_indices = @transform_8, window_bounds = array<i64: 1, 128>}, {transform_indices = @transform_9, window_bounds = array<i64: 1, 8, 128>}]} {
    %c0_i32 = arith.constant 0 : i32
    %0 = arith.cmpi eq, %arg1, %c0_i32 : i32
    %1 = arith.extui %0 : i1 to i32
    %c0_i32_0 = arith.constant 0 : i32
    %2 = arith.cmpi ne, %1, %c0_i32_0 : i32
    scf.if %2 {
      %c0_40 = arith.constant 0 : index
      %c0_41 = arith.constant 0 : index
      %c0_42 = arith.constant 0 : index
      %89 = vector.load %arg2[%c0_40, %c0_41, %c0_42] : memref<1x8x128xf32, #tpu.memory_space<vmem>>, vector<1x8x128xf32>
      %90 = vector.shape_cast %89 : vector<1x8x128xf32> to vector<8x128xf32>
      %c0_43 = arith.constant 0 : index
      %c0_44 = arith.constant 0 : index
      %91 = vector.load %arg5[%c0_43, %c0_44] : memref<128x12xf32, #tpu.memory_space<vmem>>, vector<128x12xf32>
      %cst_45 = arith.constant dense<0.000000e+00> : vector<8x12xf32>
      %92 = tpu.matmul %90, %91, %cst_45 {dimension_numbers = #tpu.dot_dimension_numbers<[1], [0], [0], [1], [0, 0, 1, 1], [], []>} : vector<8x128xf32>, vector<128x12xf32>, vector<8x12xf32> -> vector<8x12xf32>
      %c0_46 = arith.constant 0 : index
      %c0_47 = arith.constant 0 : index
      %93 = vector.load %arg6[%c0_46, %c0_47] : memref<1x12xf32, #tpu.memory_space<vmem>>, vector<1x12xf32>
      %94 = vector.broadcast %93 : vector<1x12xf32> to vector<8x12xf32>
      %95 = arith.addf %92, %94 : vector<8x12xf32>
      %c0_48 = arith.constant 0 : index
      %c0_49 = arith.constant 0 : index
      %96 = vector.load %arg7[%c0_48, %c0_49] : memref<128x12xf32, #tpu.memory_space<vmem>>, vector<128x12xf32>
      %cst_50 = arith.constant dense<0.000000e+00> : vector<8x12xf32>
      %97 = tpu.matmul %90, %96, %cst_50 {dimension_numbers = #tpu.dot_dimension_numbers<[1], [0], [0], [1], [0, 0, 1, 1], [], []>} : vector<8x128xf32>, vector<128x12xf32>, vector<8x12xf32> -> vector<8x12xf32>
      %c0_51 = arith.constant 0 : index
      %c0_52 = arith.constant 0 : index
      %98 = vector.load %arg8[%c0_51, %c0_52] : memref<1x12xf32, #tpu.memory_space<vmem>>, vector<1x12xf32>
      %99 = vector.broadcast %98 : vector<1x12xf32> to vector<8x12xf32>
      %100 = arith.addf %97, %99 : vector<8x12xf32>
      %c0_53 = arith.constant 0 : index
      %c0_54 = arith.constant 0 : index
      %101 = vector.load %arg12[%c0_53, %c0_54] : memref<8x12xf32, #tpu.memory_space<vmem>>, vector<8x12xf32>
      tpu.vector_store %arg12[%c0_53, %c0_54], %95 {strides = array<i32>} : memref<8x12xf32, #tpu.memory_space<vmem>>, vector<8x12xf32>,
      %c0_55 = arith.constant 0 : index
      %c0_56 = arith.constant 0 : index
      %102 = vector.load %arg13[%c0_55, %c0_56] : memref<8x12xf32, #tpu.memory_space<vmem>>, vector<8x12xf32>
      tpu.vector_store %arg13[%c0_55, %c0_56], %100 {strides = array<i32>} : memref<8x12xf32, #tpu.memory_space<vmem>>, vector<8x12xf32>,
    } else {
    }
    %c8_i32 = arith.constant 8 : i32
    %3 = arith.muli %arg1, %c8_i32 : i32
    %4 = tpu.assume_multiple %3, 8 : i32
    %c0 = arith.constant 0 : index
    %5 = arith.index_cast %4 : i32 to index
    %c0_1 = arith.constant 0 : index
    %6 = vector.load %arg2[%c0, %5, %c0_1] : memref<1x8x128xf32, #tpu.memory_space<vmem>>, vector<1x8x128xf32>
    %7 = vector.shape_cast %6 : vector<1x8x128xf32> to vector<8x128xf32>
    %c0_2 = arith.constant 0 : index
    %c0_3 = arith.constant 0 : index
    %8 = vector.load %arg3[%c0_2, %c0_3] : memref<128x12xf32, #tpu.memory_space<vmem>>, vector<128x12xf32>
    %cst = arith.constant dense<0.000000e+00> : vector<8x12xf32>
    %9 = tpu.matmul %7, %8, %cst {dimension_numbers = #tpu.dot_dimension_numbers<[1], [0], [0], [1], [0, 0, 1, 1], [], []>} : vector<8x128xf32>, vector<128x12xf32>, vector<8x12xf32> -> vector<8x12xf32>
    %c0_4 = arith.constant 0 : index
    %c0_5 = arith.constant 0 : index
    %10 = vector.load %arg4[%c0_4, %c0_5] : memref<1x12xf32, #tpu.memory_space<vmem>>, vector<1x12xf32>
    %11 = vector.broadcast %10 : vector<1x12xf32> to vector<8x12xf32>
    %12 = arith.addf %9, %11 : vector<8x12xf32>
    %cst_6 = arith.constant 5.000000e-01 : f32
    %13 = vector.broadcast %cst_6 : f32 to vector<8x12xf32>
    %14 = arith.mulf %12, %13 : vector<8x12xf32>
    %c0_7 = arith.constant 0 : index
    %c0_8 = arith.constant 0 : index
    %15 = vector.load %arg12[%c0_7, %c0_8] : memref<8x12xf32, #tpu.memory_space<vmem>>, vector<8x12xf32>
    %c0_9 = arith.constant 0 : index
    %c0_10 = arith.constant 0 : index
    %16 = vector.load %arg13[%c0_9, %c0_10] : memref<8x12xf32, #tpu.memory_space<vmem>>, vector<8x12xf32>
    %17 = tpu.iota {dimensions = array<i32: 1>} : vector<1x8xi32>
    %c5_i32 = arith.constant 5 : i32
    %18 = vector.broadcast %c5_i32 : i32 to vector<1x8xi32>
    %19 = arith.cmpi slt, %17, %18 : vector<1x8xi32>
    %20 = vector.extract_strided_slice %14 {offsets = [0, 0], sizes = [8, 4], strides = [1, 1]} : vector<8x12xf32> to vector<8x4xf32>
    %21 = vector.extract_strided_slice %15 {offsets = [0, 0], sizes = [8, 4], strides = [1, 1]} : vector<8x12xf32> to vector<8x4xf32>
    %22 = vector.extract_strided_slice %16 {offsets = [0, 0], sizes = [8, 4], strides = [1, 1]} : vector<8x12xf32> to vector<8x4xf32>
    %cst_11 = arith.constant dense<0.000000e+00> : vector<8x8xf32>
    %23 = tpu.matmul %20, %21, %cst_11 {dimension_numbers = #tpu.dot_dimension_numbers<[1], [1], [0], [0], [0, 0, 1, 0], [], []>} : vector<8x4xf32>, vector<8x4xf32>, vector<8x8xf32> -> vector<8x8xf32>
    %cst_12 = arith.constant -1.000000e+30 : f32
    %24 = vector.shape_cast %19 : vector<1x8xi1> to vector<1x8xi1>
    %25 = vector.broadcast %24 : vector<1x8xi1> to vector<8x8xi1>
    %26 = vector.broadcast %cst_12 : f32 to vector<8x8xf32>
    %27 = arith.select %25, %23, %26 : vector<8x8xi1>, vector<8x8xf32>
    %cst_13 = arith.constant dense<0xFF800000> : vector<8xf32>
    %28 = vector.multi_reduction <maximumf>, %27, %cst_13 [1] : vector<8x8xf32> to vector<8xf32>
    %29 = vector.shape_cast %28 : vector<8xf32> to vector<8x1xf32>
    %30 = vector.broadcast %29 : vector<8x1xf32> to vector<8x8xf32>
    %31 = arith.subf %27, %30 : vector<8x8xf32>
    %32 = math.exp %31 : vector<8x8xf32>
    %cst_14 = arith.constant dense<0.000000e+00> : vector<8xf32>
    %33 = vector.multi_reduction <add>, %32, %cst_14 [1] : vector<8x8xf32> to vector<8xf32>
    %34 = vector.shape_cast %33 : vector<8xf32> to vector<8x1xf32>
    %35 = tpu.reciprocal %34 : vector<8x1xf32> -> vector<8x1xf32>
    %36 = vector.broadcast %35 : vector<8x1xf32> to vector<8x8xf32>
    %37 = arith.mulf %32, %36 : vector<8x8xf32>
    %cst_15 = arith.constant dense<0.000000e+00> : vector<8x4xf32>
    %38 = tpu.matmul %37, %22, %cst_15 {dimension_numbers = #tpu.dot_dimension_numbers<[1], [0], [0], [1], [0, 0, 1, 1], [], []>} : vector<8x8xf32>, vector<8x4xf32>, vector<8x4xf32> -> vector<8x4xf32>
    %c0_16 = arith.constant 0 : index
    %c0_17 = arith.constant 0 : index
    %39 = vector.load %arg14[%c0_16, %c0_17] : memref<8x12xf32, #tpu.memory_space<vmem>>, vector<8x4xf32>
    tpu.vector_store %arg14[%c0_16, %c0_17], %38 {strides = array<i32>} : memref<8x12xf32, #tpu.memory_space<vmem>>, vector<8x4xf32>,
    %40 = vector.extract_strided_slice %14 {offsets = [0, 4], sizes = [8, 4], strides = [1, 1]} : vector<8x12xf32> to vector<8x4xf32>
    %41 = vector.extract_strided_slice %15 {offsets = [0, 4], sizes = [8, 4], strides = [1, 1]} : vector<8x12xf32> to vector<8x4xf32>
    %42 = vector.extract_strided_slice %16 {offsets = [0, 4], sizes = [8, 4], strides = [1, 1]} : vector<8x12xf32> to vector<8x4xf32>
    %cst_18 = arith.constant dense<0.000000e+00> : vector<8x8xf32>
    %43 = tpu.matmul %40, %41, %cst_18 {dimension_numbers = #tpu.dot_dimension_numbers<[1], [1], [0], [0], [0, 0, 1, 0], [], []>} : vector<8x4xf32>, vector<8x4xf32>, vector<8x8xf32> -> vector<8x8xf32>
    %cst_19 = arith.constant -1.000000e+30 : f32
    %44 = vector.shape_cast %19 : vector<1x8xi1> to vector<1x8xi1>
    %45 = vector.broadcast %44 : vector<1x8xi1> to vector<8x8xi1>
    %46 = vector.broadcast %cst_19 : f32 to vector<8x8xf32>
    %47 = arith.select %45, %43, %46 : vector<8x8xi1>, vector<8x8xf32>
    %cst_20 = arith.constant dense<0xFF800000> : vector<8xf32>
    %48 = vector.multi_reduction <maximumf>, %47, %cst_20 [1] : vector<8x8xf32> to vector<8xf32>
    %49 = vector.shape_cast %48 : vector<8xf32> to vector<8x1xf32>
    %50 = vector.broadcast %49 : vector<8x1xf32> to vector<8x8xf32>
    %51 = arith.subf %47, %50 : vector<8x8xf32>
    %52 = math.exp %51 : vector<8x8xf32>
    %cst_21 = arith.constant dense<0.000000e+00> : vector<8xf32>
    %53 = vector.multi_reduction <add>, %52, %cst_21 [1] : vector<8x8xf32> to vector<8xf32>
    %54 = vector.shape_cast %53 : vector<8xf32> to vector<8x1xf32>
    %55 = tpu.reciprocal %54 : vector<8x1xf32> -> vector<8x1xf32>
    %56 = vector.broadcast %55 : vector<8x1xf32> to vector<8x8xf32>
    %57 = arith.mulf %52, %56 : vector<8x8xf32>
    %cst_22 = arith.constant dense<0.000000e+00> : vector<8x4xf32>
    %58 = tpu.matmul %57, %42, %cst_22 {dimension_numbers = #tpu.dot_dimension_numbers<[1], [0], [0], [1], [0, 0, 1, 1], [], []>} : vector<8x8xf32>, vector<8x4xf32>, vector<8x4xf32> -> vector<8x4xf32>
    %c0_23 = arith.constant 0 : index
    %c4 = arith.constant 4 : index
    %59 = vector.load %arg14[%c0_23, %c4] : memref<8x12xf32, #tpu.memory_space<vmem>>, vector<8x4xf32>
    tpu.vector_store %arg14[%c0_23, %c4], %58 {strides = array<i32>} : memref<8x12xf32, #tpu.memory_space<vmem>>, vector<8x4xf32>,
    %60 = vector.extract_strided_slice %14 {offsets = [0, 8], sizes = [8, 4], strides = [1, 1]} : vector<8x12xf32> to vector<8x4xf32>
    %61 = vector.extract_strided_slice %15 {offsets = [0, 8], sizes = [8, 4], strides = [1, 1]} : vector<8x12xf32> to vector<8x4xf32>
    %62 = vector.extract_strided_slice %16 {offsets = [0, 8], sizes = [8, 4], strides = [1, 1]} : vector<8x12xf32> to vector<8x4xf32>
    %cst_24 = arith.constant dense<0.000000e+00> : vector<8x8xf32>
    %63 = tpu.matmul %60, %61, %cst_24 {dimension_numbers = #tpu.dot_dimension_numbers<[1], [1], [0], [0], [0, 0, 1, 0], [], []>} : vector<8x4xf32>, vector<8x4xf32>, vector<8x8xf32> -> vector<8x8xf32>
    %cst_25 = arith.constant -1.000000e+30 : f32
    %64 = vector.shape_cast %19 : vector<1x8xi1> to vector<1x8xi1>
    %65 = vector.broadcast %64 : vector<1x8xi1> to vector<8x8xi1>
    %66 = vector.broadcast %cst_25 : f32 to vector<8x8xf32>
    %67 = arith.select %65, %63, %66 : vector<8x8xi1>, vector<8x8xf32>
    %cst_26 = arith.constant dense<0xFF800000> : vector<8xf32>
    %68 = vector.multi_reduction <maximumf>, %67, %cst_26 [1] : vector<8x8xf32> to vector<8xf32>
    %69 = vector.shape_cast %68 : vector<8xf32> to vector<8x1xf32>
    %70 = vector.broadcast %69 : vector<8x1xf32> to vector<8x8xf32>
    %71 = arith.subf %67, %70 : vector<8x8xf32>
    %72 = math.exp %71 : vector<8x8xf32>
    %cst_27 = arith.constant dense<0.000000e+00> : vector<8xf32>
    %73 = vector.multi_reduction <add>, %72, %cst_27 [1] : vector<8x8xf32> to vector<8xf32>
    %74 = vector.shape_cast %73 : vector<8xf32> to vector<8x1xf32>
    %75 = tpu.reciprocal %74 : vector<8x1xf32> -> vector<8x1xf32>
    %76 = vector.broadcast %75 : vector<8x1xf32> to vector<8x8xf32>
    %77 = arith.mulf %72, %76 : vector<8x8xf32>
    %cst_28 = arith.constant dense<0.000000e+00> : vector<8x4xf32>
    %78 = tpu.matmul %77, %62, %cst_28 {dimension_numbers = #tpu.dot_dimension_numbers<[1], [0], [0], [1], [0, 0, 1, 1], [], []>} : vector<8x8xf32>, vector<8x4xf32>, vector<8x4xf32> -> vector<8x4xf32>
    %c0_29 = arith.constant 0 : index
    %c8 = arith.constant 8 : index
    %79 = vector.load %arg14[%c0_29, %c8] : memref<8x12xf32, #tpu.memory_space<vmem>>, vector<8x4xf32>
    tpu.vector_store %arg14[%c0_29, %c8], %78 {strides = array<i32>} : memref<8x12xf32, #tpu.memory_space<vmem>>, vector<8x4xf32>,
    %c0_30 = arith.constant 0 : index
    %c0_31 = arith.constant 0 : index
    %80 = vector.load %arg14[%c0_30, %c0_31] : memref<8x12xf32, #tpu.memory_space<vmem>>, vector<8x12xf32>
    %c0_32 = arith.constant 0 : index
    %c0_33 = arith.constant 0 : index
    %81 = vector.load %arg9[%c0_32, %c0_33] : memref<12x128xf32, #tpu.memory_space<vmem>>, vector<12x128xf32>
    %cst_34 = arith.constant dense<0.000000e+00> : vector<8x128xf32>
    %82 = tpu.matmul %80, %81, %cst_34 {dimension_numbers = #tpu.dot_dimension_numbers<[1], [0], [0], [1], [0, 0, 1, 1], [], []>} : vector<8x12xf32>, vector<12x128xf32>, vector<8x128xf32> -> vector<8x128xf32>
    %c0_35 = arith.constant 0 : index
    %c0_36 = arith.constant 0 : index
    %83 = vector.load %arg10[%c0_35, %c0_36] : memref<1x128xf32, #tpu.memory_space<vmem>>, vector<1x128xf32>
    %84 = vector.broadcast %83 : vector<1x128xf32> to vector<8x128xf32>
    %85 = arith.addf %82, %84 : vector<8x128xf32>
    %c0_37 = arith.constant 0 : index
    %c0_38 = arith.constant 0 : index
    %c0_39 = arith.constant 0 : index
    %86 = vector.load %arg11[%c0_37, %c0_38, %c0_39] : memref<1x8x128xf32, #tpu.memory_space<vmem>>, vector<1x8x128xf32>
    %87 = vector.shape_cast %86 : vector<1x8x128xf32> to vector<8x128xf32>
    %88 = vector.shape_cast %85 : vector<8x128xf32> to vector<1x8x128xf32>
    tpu.vector_store %arg11[%c0_37, %c0_38, %c0_39], %88 {strides = array<i32>} : memref<1x8x128xf32, #tpu.memory_space<vmem>>, vector<1x8x128xf32>,
    return
  }
  func.func @transform_0(%arg0: i32, %arg1: i32) -> (i32, i32, i32) {
    %c0_i32 = arith.constant 0 : i32
    %c0_i32_0 = arith.constant 0 : i32
    %c0_i32_1 = arith.constant 0 : i32
    return %arg0, %c0_i32, %c0_i32_0 : i32, i32, i32
  }
  func.func @transform_1(%arg0: i32, %arg1: i32) -> (i32, i32) {
    %c0_i32 = arith.constant 0 : i32
    %c0_i32_0 = arith.constant 0 : i32
    %c0_i32_1 = arith.constant 0 : i32
    return %c0_i32, %c0_i32_0 : i32, i32
  }
  func.func @transform_2(%arg0: i32, %arg1: i32) -> (i32, i32) {
    %c0_i32 = arith.constant 0 : i32
    %c0_i32_0 = arith.constant 0 : i32
    %c0_i32_1 = arith.constant 0 : i32
    return %c0_i32, %c0_i32_0 : i32, i32
  }
  func.func @transform_3(%arg0: i32, %arg1: i32) -> (i32, i32) {
    %c0_i32 = arith.constant 0 : i32
    %c0_i32_0 = arith.constant 0 : i32
    %c0_i32_1 = arith.constant 0 : i32
    return %c0_i32, %c0_i32_0 : i32, i32
  }
  func.func @transform_4(%arg0: i32, %arg1: i32) -> (i32, i32) {
    %c0_i32 = arith.constant 0 : i32
    %c0_i32_0 = arith.constant 0 : i32
    %c0_i32_1 = arith.constant 0 : i32
    return %c0_i32, %c0_i32_0 : i32, i32
  }
  func.func @transform_5(%arg0: i32, %arg1: i32) -> (i32, i32) {
    %c0_i32 = arith.constant 0 : i32
    %c0_i32_0 = arith.constant 0 : i32
    %c0_i32_1 = arith.constant 0 : i32
    return %c0_i32, %c0_i32_0 : i32, i32
  }
  func.func @transform_6(%arg0: i32, %arg1: i32) -> (i32, i32) {
    %c0_i32 = arith.constant 0 : i32
    %c0_i32_0 = arith.constant 0 : i32
    %c0_i32_1 = arith.constant 0 : i32
    return %c0_i32, %c0_i32_0 : i32, i32
  }
  func.func @transform_7(%arg0: i32, %arg1: i32) -> (i32, i32) {
    %c0_i32 = arith.constant 0 : i32
    %c0_i32_0 = arith.constant 0 : i32
    %c0_i32_1 = arith.constant 0 : i32
    return %c0_i32, %c0_i32_0 : i32, i32
  }
  func.func @transform_8(%arg0: i32, %arg1: i32) -> (i32, i32) {
    %c0_i32 = arith.constant 0 : i32
    %c0_i32_0 = arith.constant 0 : i32
    %c0_i32_1 = arith.constant 0 : i32
    return %c0_i32, %c0_i32_0 : i32, i32
  }
  func.func @transform_9(%arg0: i32, %arg1: i32) -> (i32, i32, i32) {
    %c0_i32 = arith.constant 0 : i32
    %c0_i32_0 = arith.constant 0 : i32
    return %arg0, %arg1, %c0_i32 : i32, i32, i32
  }
}

module attributes {stable_mosaic.version = 11 : i64} {
  func.func @_mha_kernel(%arg0: i32, %arg1: i32, %arg2: memref<1x8x128xf32, #tpu.memory_space<vmem>>, %arg3: memref<128x12xf32, #tpu.memory_space<vmem>>, %arg4: memref<1x12xf32, #tpu.memory_space<vmem>>, %arg5: memref<128x12xf32, #tpu.memory_space<vmem>>, %arg6: memref<1x12xf32, #tpu.memory_space<vmem>>, %arg7: memref<128x12xf32, #tpu.memory_space<vmem>>, %arg8: memref<1x12xf32, #tpu.memory_space<vmem>>, %arg9: memref<12x128xf32, #tpu.memory_space<vmem>>, %arg10: memref<1x128xf32, #tpu.memory_space<vmem>>, %arg11: memref<1x8x128xf32, #tpu.memory_space<vmem>>, %arg12: memref<8x12xf32, #tpu.memory_space<vmem>>, %arg13: memref<8x12xf32, #tpu.memory_space<vmem>>, %arg14: memref<8x12xf32, #tpu.memory_space<vmem>>) attributes {dimension_semantics = [#tpu.dimension_semantics<parallel>, #tpu.dimension_semantics<arbitrary>], iteration_bounds = array<i64: 2, 1>, scalar_prefetch = 0 : i64, scratch_operands = 3 : i64, tpu.core_type = #tpu.core_type<tc>, window_params = [{transform_indices = @transform_0, window_bounds = array<i64: 1, 8, 128>}, {pipeline_mode = #tpu.pipeline_mode<synchronous>, transform_indices = @transform_1, window_bounds = array<i64: 128, 12>}, {pipeline_mode = #tpu.pipeline_mode<synchronous>, transform_indices = @transform_2, window_bounds = array<i64: 1, 12>}, {pipeline_mode = #tpu.pipeline_mode<synchronous>, transform_indices = @transform_3, window_bounds = array<i64: 128, 12>}, {pipeline_mode = #tpu.pipeline_mode<synchronous>, transform_indices = @transform_4, window_bounds = array<i64: 1, 12>}, {pipeline_mode = #tpu.pipeline_mode<synchronous>, transform_indices = @transform_5, window_bounds = array<i64: 128, 12>}, {pipeline_mode = #tpu.pipeline_mode<synchronous>, transform_indices = @transform_6, window_bounds = array<i64: 1, 12>}, {pipeline_mode = #tpu.pipeline_mode<synchronous>, transform_indices = @transform_7, window_bounds = array<i64: 12, 128>}, {pipeline_mode = #tpu.pipeline_mode<synchronous>, transform_indices = @transform_8, window_bounds = array<i64: 1, 128>}, {transform_indices = @transform_9, window_bounds = array<i64: 1, 8, 128>}]} {
    %c0_i32 = arith.constant 0 : i32
    %0 = arith.cmpi eq, %arg1, %c0_i32 : i32
    %1 = arith.extui %0 : i1 to i32
    %c0_i32_0 = arith.constant 0 : i32
    %2 = arith.cmpi ne, %1, %c0_i32_0 : i32
    scf.if %2 {
      %c0_40 = arith.constant 0 : index
      %c0_41 = arith.constant 0 : index
      %c0_42 = arith.constant 0 : index
      %89 = vector.load %arg2[%c0_40, %c0_41, %c0_42] : memref<1x8x128xf32, #tpu.memory_space<vmem>>, vector<1x8x128xf32>
      %90 = vector.shape_cast %89 : vector<1x8x128xf32> to vector<8x128xf32>
      %c0_43 = arith.constant 0 : index
      %c0_44 = arith.constant 0 : index
      %91 = vector.load %arg5[%c0_43, %c0_44] : memref<128x12xf32, #tpu.memory_space<vmem>>, vector<128x12xf32>
      %cst_45 = arith.constant dense<0.000000e+00> : vector<8x12xf32>
      %92 = tpu.matmul %90, %91, %cst_45 {dimension_numbers = #tpu.dot_dimension_numbers<[1], [0], [0], [1], [0, 0, 1, 1], [], []>} : vector<8x128xf32>, vector<128x12xf32>, vector<8x12xf32> -> vector<8x12xf32>
      %c0_46 = arith.constant 0 : index
      %c0_47 = arith.constant 0 : index
      %93 = vector.load %arg6[%c0_46, %c0_47] : memref<1x12xf32, #tpu.memory_space<vmem>>, vector<1x12xf32>
      %94 = vector.broadcast %93 : vector<1x12xf32> to vector<8x12xf32>
      %95 = arith.addf %92, %94 : vector<8x12xf32>
      %c0_48 = arith.constant 0 : index
      %c0_49 = arith.constant 0 : index
      %96 = vector.load %arg7[%c0_48, %c0_49] : memref<128x12xf32, #tpu.memory_space<vmem>>, vector<128x12xf32>
      %cst_50 = arith.constant dense<0.000000e+00> : vector<8x12xf32>
      %97 = tpu.matmul %90, %96, %cst_50 {dimension_numbers = #tpu.dot_dimension_numbers<[1], [0], [0], [1], [0, 0, 1, 1], [], []>} : vector<8x128xf32>, vector<128x12xf32>, vector<8x12xf32> -> vector<8x12xf32>
      %c0_51 = arith.constant 0 : index
      %c0_52 = arith.constant 0 : index
      %98 = vector.load %arg8[%c0_51, %c0_52] : memref<1x12xf32, #tpu.memory_space<vmem>>, vector<1x12xf32>
      %99 = vector.broadcast %98 : vector<1x12xf32> to vector<8x12xf32>
      %100 = arith.addf %97, %99 : vector<8x12xf32>
      %c0_53 = arith.constant 0 : index
      %c0_54 = arith.constant 0 : index
      %101 = vector.load %arg12[%c0_53, %c0_54] : memref<8x12xf32, #tpu.memory_space<vmem>>, vector<8x12xf32>
      tpu.vector_store %arg12[%c0_53, %c0_54], %95 {strides = array<i32>} : memref<8x12xf32, #tpu.memory_space<vmem>>, vector<8x12xf32>,
      %c0_55 = arith.constant 0 : index
      %c0_56 = arith.constant 0 : index
      %102 = vector.load %arg13[%c0_55, %c0_56] : memref<8x12xf32, #tpu.memory_space<vmem>>, vector<8x12xf32>
      tpu.vector_store %arg13[%c0_55, %c0_56], %100 {strides = array<i32>} : memref<8x12xf32, #tpu.memory_space<vmem>>, vector<8x12xf32>,
    } else {
    }
    %c8_i32 = arith.constant 8 : i32
    %3 = arith.muli %arg1, %c8_i32 : i32
    %4 = tpu.assume_multiple %3, 8 : i32
    %c0 = arith.constant 0 : index
    %5 = arith.index_cast %4 : i32 to index
    %c0_1 = arith.constant 0 : index
    %6 = vector.load %arg2[%c0, %5, %c0_1] : memref<1x8x128xf32, #tpu.memory_space<vmem>>, vector<1x8x128xf32>
    %7 = vector.shape_cast %6 : vector<1x8x128xf32> to vector<8x128xf32>
    %c0_2 = arith.constant 0 : index
    %c0_3 = arith.constant 0 : index
    %8 = vector.load %arg3[%c0_2, %c0_3] : memref<128x12xf32, #tpu.memory_space<vmem>>, vector<128x12xf32>
    %cst = arith.constant dense<0.000000e+00> : vector<8x12xf32>
    %9 = tpu.matmul %7, %8, %cst {dimension_numbers = #tpu.dot_dimension_numbers<[1], [0], [0], [1], [0, 0, 1, 1], [], []>} : vector<8x128xf32>, vector<128x12xf32>, vector<8x12xf32> -> vector<8x12xf32>
    %c0_4 = arith.constant 0 : index
    %c0_5 = arith.constant 0 : index
    %10 = vector.load %arg4[%c0_4, %c0_5] : memref<1x12xf32, #tpu.memory_space<vmem>>, vector<1x12xf32>
    %11 = vector.broadcast %10 : vector<1x12xf32> to vector<8x12xf32>
    %12 = arith.addf %9, %11 : vector<8x12xf32>
    %cst_6 = arith.constant 5.000000e-01 : f32
    %13 = vector.broadcast %cst_6 : f32 to vector<8x12xf32>
    %14 = arith.mulf %12, %13 : vector<8x12xf32>
    %c0_7 = arith.constant 0 : index
    %c0_8 = arith.constant 0 : index
    %15 = vector.load %arg12[%c0_7, %c0_8] : memref<8x12xf32, #tpu.memory_space<vmem>>, vector<8x12xf32>
    %c0_9 = arith.constant 0 : index
    %c0_10 = arith.constant 0 : index
    %16 = vector.load %arg13[%c0_9, %c0_10] : memref<8x12xf32, #tpu.memory_space<vmem>>, vector<8x12xf32>
    %17 = tpu.iota {dimensions = array<i32: 1>} : vector<1x8xi32>
    %c5_i32 = arith.constant 5 : i32
    %18 = vector.broadcast %c5_i32 : i32 to vector<1x8xi32>
    %19 = arith.cmpi slt, %17, %18 : vector<1x8xi32>
    %20 = vector.extract_strided_slice %14 {offsets = [0, 0], sizes = [8, 4], strides = [1, 1]} : vector<8x12xf32> to vector<8x4xf32>
    %21 = vector.extract_strided_slice %15 {offsets = [0, 0], sizes = [8, 4], strides = [1, 1]} : vector<8x12xf32> to vector<8x4xf32>
    %22 = vector.extract_strided_slice %16 {offsets = [0, 0], sizes = [8, 4], strides = [1, 1]} : vector<8x12xf32> to vector<8x4xf32>
    %cst_11 = arith.constant dense<0.000000e+00> : vector<8x8xf32>
    %23 = tpu.matmul %20, %21, %cst_11 {dimension_numbers = #tpu.dot_dimension_numbers<[1], [1], [0], [0], [0, 0, 1, 0], [], []>} : vector<8x4xf32>, vector<8x4xf32>, vector<8x8xf32> -> vector<8x8xf32>
    %cst_12 = arith.constant -1.000000e+30 : f32
    %24 = vector.shape_cast %19 : vector<1x8xi1> to vector<1x8xi1>
    %25 = vector.broadcast %24 : vector<1x8xi1> to vector<8x8xi1>
    %26 = vector.broadcast %cst_12 : f32 to vector<8x8xf32>
    %27 = arith.select %25, %23, %26 : vector<8x8xi1>, vector<8x8xf32>
    %cst_13 = arith.constant dense<0xFF800000> : vector<8xf32>
    %28 = vector.multi_reduction <maximumf>, %27, %cst_13 [1] : vector<8x8xf32> to vector<8xf32>
    %29 = vector.shape_cast %28 : vector<8xf32> to vector<8x1xf32>
    %30 = vector.broadcast %29 : vector<8x1xf32> to vector<8x8xf32>
    %31 = arith.subf %27, %30 : vector<8x8xf32>
    %32 = math.exp %31 : vector<8x8xf32>
    %cst_14 = arith.constant dense<0.000000e+00> : vector<8xf32>
    %33 = vector.multi_reduction <add>, %32, %cst_14 [1] : vector<8x8xf32> to vector<8xf32>
    %34 = vector.shape_cast %33 : vector<8xf32> to vector<8x1xf32>
    %35 = tpu.reciprocal %34 : vector<8x1xf32> -> vector<8x1xf32>
    %36 = vector.broadcast %35 : vector<8x1xf32> to vector<8x8xf32>
    %37 = arith.mulf %32, %36 : vector<8x8xf32>
    %cst_15 = arith.constant dense<0.000000e+00> : vector<8x4xf32>
    %38 = tpu.matmul %37, %22, %cst_15 {dimension_numbers = #tpu.dot_dimension_numbers<[1], [0], [0], [1], [0, 0, 1, 1], [], []>} : vector<8x8xf32>, vector<8x4xf32>, vector<8x4xf32> -> vector<8x4xf32>
    %c0_16 = arith.constant 0 : index
    %c0_17 = arith.constant 0 : index
    %39 = vector.load %arg14[%c0_16, %c0_17] : memref<8x12xf32, #tpu.memory_space<vmem>>, vector<8x4xf32>
    tpu.vector_store %arg14[%c0_16, %c0_17], %38 {strides = array<i32>} : memref<8x12xf32, #tpu.memory_space<vmem>>, vector<8x4xf32>,
    %40 = vector.extract_strided_slice %14 {offsets = [0, 4], sizes = [8, 4], strides = [1, 1]} : vector<8x12xf32> to vector<8x4xf32>
    %41 = vector.extract_strided_slice %15 {offsets = [0, 4], sizes = [8, 4], strides = [1, 1]} : vector<8x12xf32> to vector<8x4xf32>
    %42 = vector.extract_strided_slice %16 {offsets = [0, 4], sizes = [8, 4], strides = [1, 1]} : vector<8x12xf32> to vector<8x4xf32>
    %cst_18 = arith.constant dense<0.000000e+00> : vector<8x8xf32>
    %43 = tpu.matmul %40, %41, %cst_18 {dimension_numbers = #tpu.dot_dimension_numbers<[1], [1], [0], [0], [0, 0, 1, 0], [], []>} : vector<8x4xf32>, vector<8x4xf32>, vector<8x8xf32> -> vector<8x8xf32>
    %cst_19 = arith.constant -1.000000e+30 : f32
    %44 = vector.shape_cast %19 : vector<1x8xi1> to vector<1x8xi1>
    %45 = vector.broadcast %44 : vector<1x8xi1> to vector<8x8xi1>
    %46 = vector.broadcast %cst_19 : f32 to vector<8x8xf32>
    %47 = arith.select %45, %43, %46 : vector<8x8xi1>, vector<8x8xf32>
    %cst_20 = arith.constant dense<0xFF800000> : vector<8xf32>
    %48 = vector.multi_reduction <maximumf>, %47, %cst_20 [1] : vector<8x8xf32> to vector<8xf32>
    %49 = vector.shape_cast %48 : vector<8xf32> to vector<8x1xf32>
    %50 = vector.broadcast %49 : vector<8x1xf32> to vector<8x8xf32>
    %51 = arith.subf %47, %50 : vector<8x8xf32>
    %52 = math.exp %51 : vector<8x8xf32>
    %cst_21 = arith.constant dense<0.000000e+00> : vector<8xf32>
    %53 = vector.multi_reduction <add>, %52, %cst_21 [1] : vector<8x8xf32> to vector<8xf32>
    %54 = vector.shape_cast %53 : vector<8xf32> to vector<8x1xf32>
    %55 = tpu.reciprocal %54 : vector<8x1xf32> -> vector<8x1xf32>
    %56 = vector.broadcast %55 : vector<8x1xf32> to vector<8x8xf32>
    %57 = arith.mulf %52, %56 : vector<8x8xf32>
    %cst_22 = arith.constant dense<0.000000e+00> : vector<8x4xf32>
    %58 = tpu.matmul %57, %42, %cst_22 {dimension_numbers = #tpu.dot_dimension_numbers<[1], [0], [0], [1], [0, 0, 1, 1], [], []>} : vector<8x8xf32>, vector<8x4xf32>, vector<8x4xf32> -> vector<8x4xf32>
    %c0_23 = arith.constant 0 : index
    %c4 = arith.constant 4 : index
    %59 = vector.load %arg14[%c0_23, %c4] : memref<8x12xf32, #tpu.memory_space<vmem>>, vector<8x4xf32>
    tpu.vector_store %arg14[%c0_23, %c4], %58 {strides = array<i32>} : memref<8x12xf32, #tpu.memory_space<vmem>>, vector<8x4xf32>,
    %60 = vector.extract_strided_slice %14 {offsets = [0, 8], sizes = [8, 4], strides = [1, 1]} : vector<8x12xf32> to vector<8x4xf32>
    %61 = vector.extract_strided_slice %15 {offsets = [0, 8], sizes = [8, 4], strides = [1, 1]} : vector<8x12xf32> to vector<8x4xf32>
    %62 = vector.extract_strided_slice %16 {offsets = [0, 8], sizes = [8, 4], strides = [1, 1]} : vector<8x12xf32> to vector<8x4xf32>
    %cst_24 = arith.constant dense<0.000000e+00> : vector<8x8xf32>
    %63 = tpu.matmul %60, %61, %cst_24 {dimension_numbers = #tpu.dot_dimension_numbers<[1], [1], [0], [0], [0, 0, 1, 0], [], []>} : vector<8x4xf32>, vector<8x4xf32>, vector<8x8xf32> -> vector<8x8xf32>
    %cst_25 = arith.constant -1.000000e+30 : f32
    %64 = vector.shape_cast %19 : vector<1x8xi1> to vector<1x8xi1>
    %65 = vector.broadcast %64 : vector<1x8xi1> to vector<8x8xi1>
    %66 = vector.broadcast %cst_25 : f32 to vector<8x8xf32>
    %67 = arith.select %65, %63, %66 : vector<8x8xi1>, vector<8x8xf32>
    %cst_26 = arith.constant dense<0xFF800000> : vector<8xf32>
    %68 = vector.multi_reduction <maximumf>, %67, %cst_26 [1] : vector<8x8xf32> to vector<8xf32>
    %69 = vector.shape_cast %68 : vector<8xf32> to vector<8x1xf32>
    %70 = vector.broadcast %69 : vector<8x1xf32> to vector<8x8xf32>
    %71 = arith.subf %67, %70 : vector<8x8xf32>
    %72 = math.exp %71 : vector<8x8xf32>
    %cst_27 = arith.constant dense<0.000000e+00> : vector<8xf32>
    %73 = vector.multi_reduction <add>, %72, %cst_27 [1] : vector<8x8xf32> to vector<8xf32>
    %74 = vector.shape_cast %73 : vector<8xf32> to vector<8x1xf32>
    %75 = tpu.reciprocal %74 : vector<8x1xf32> -> vector<8x1xf32>
    %76 = vector.broadcast %75 : vector<8x1xf32> to vector<8x8xf32>
    %77 = arith.mulf %72, %76 : vector<8x8xf32>
    %cst_28 = arith.constant dense<0.000000e+00> : vector<8x4xf32>
    %78 = tpu.matmul %77, %62, %cst_28 {dimension_numbers = #tpu.dot_dimension_numbers<[1], [0], [0], [1], [0, 0, 1, 1], [], []>} : vector<8x8xf32>, vector<8x4xf32>, vector<8x4xf32> -> vector<8x4xf32>
    %c0_29 = arith.constant 0 : index
    %c8 = arith.constant 8 : index
    %79 = vector.load %arg14[%c0_29, %c8] : memref<8x12xf32, #tpu.memory_space<vmem>>, vector<8x4xf32>
    tpu.vector_store %arg14[%c0_29, %c8], %78 {strides = array<i32>} : memref<8x12xf32, #tpu.memory_space<vmem>>, vector<8x4xf32>,
    %c0_30 = arith.constant 0 : index
    %c0_31 = arith.constant 0 : index
    %80 = vector.load %arg14[%c0_30, %c0_31] : memref<8x12xf32, #tpu.memory_space<vmem>>, vector<8x12xf32>
    %c0_32 = arith.constant 0 : index
    %c0_33 = arith.constant 0 : index
    %81 = vector.load %arg9[%c0_32, %c0_33] : memref<12x128xf32, #tpu.memory_space<vmem>>, vector<12x128xf32>
    %cst_34 = arith.constant dense<0.000000e+00> : vector<8x128xf32>
    %82 = tpu.matmul %80, %81, %cst_34 {dimension_numbers = #tpu.dot_dimension_numbers<[1], [0], [0], [1], [0, 0, 1, 1], [], []>} : vector<8x12xf32>, vector<12x128xf32>, vector<8x128xf32> -> vector<8x128xf32>
    %c0_35 = arith.constant 0 : index
    %c0_36 = arith.constant 0 : index
    %83 = vector.load %arg10[%c0_35, %c0_36] : memref<1x128xf32, #tpu.memory_space<vmem>>, vector<1x128xf32>
    %84 = vector.broadcast %83 : vector<1x128xf32> to vector<8x128xf32>
    %85 = arith.addf %82, %84 : vector<8x128xf32>
    %c0_37 = arith.constant 0 : index
    %c0_38 = arith.constant 0 : index
    %c0_39 = arith.constant 0 : index
    %86 = vector.load %arg11[%c0_37, %c0_38, %c0_39] : memref<1x8x128xf32, #tpu.memory_space<vmem>>, vector<1x8x128xf32>
    %87 = vector.shape_cast %86 : vector<1x8x128xf32> to vector<8x128xf32>
    %88 = vector.shape_cast %85 : vector<8x128xf32> to vector<1x8x128xf32>
    tpu.vector_store %arg11[%c0_37, %c0_38, %c0_39], %88 {strides = array<i32>} : memref<1x8x128xf32, #tpu.memory_space<vmem>>, vector<1x8x128xf32>,
    return
  }
  func.func @transform_0(%arg0: i32, %arg1: i32) -> (i32, i32, i32) {
    %c0_i32 = arith.constant 0 : i32
    %c0_i32_0 = arith.constant 0 : i32
    %c0_i32_1 = arith.constant 0 : i32
    return %arg0, %c0_i32, %c0_i32_0 : i32, i32, i32
  }
  func.func @transform_1(%arg0: i32, %arg1: i32) -> (i32, i32) {
    %c0_i32 = arith.constant 0 : i32
    %c0_i32_0 = arith.constant 0 : i32
    %c0_i32_1 = arith.constant 0 : i32
    return %c0_i32, %c0_i32_0 : i32, i32
  }
  func.func @transform_2(%arg0: i32, %arg1: i32) -> (i32, i32) {
    %c0_i32 = arith.constant 0 : i32
    %c0_i32_0 = arith.constant 0 : i32
    %c0_i32_1 = arith.constant 0 : i32
    return %c0_i32, %c0_i32_0 : i32, i32
  }
  func.func @transform_3(%arg0: i32, %arg1: i32) -> (i32, i32) {
    %c0_i32 = arith.constant 0 : i32
    %c0_i32_0 = arith.constant 0 : i32
    %c0_i32_1 = arith.constant 0 : i32
    return %c0_i32, %c0_i32_0 : i32, i32
  }
  func.func @transform_4(%arg0: i32, %arg1: i32) -> (i32, i32) {
    %c0_i32 = arith.constant 0 : i32
    %c0_i32_0 = arith.constant 0 : i32
    %c0_i32_1 = arith.constant 0 : i32
    return %c0_i32, %c0_i32_0 : i32, i32
  }
  func.func @transform_5(%arg0: i32, %arg1: i32) -> (i32, i32) {
    %c0_i32 = arith.constant 0 : i32
    %c0_i32_0 = arith.constant 0 : i32
    %c0_i32_1 = arith.constant 0 : i32
    return %c0_i32, %c0_i32_0 : i32, i32
  }
  func.func @transform_6(%arg0: i32, %arg1: i32) -> (i32, i32) {
    %c0_i32 = arith.constant 0 : i32
    %c0_i32_0 = arith.constant 0 : i32
    %c0_i32_1 = arith.constant 0 : i32
    return %c0_i32, %c0_i32_0 : i32, i32
  }
  func.func @transform_7(%arg0: i32, %arg1: i32) -> (i32, i32) {
    %c0_i32 = arith.constant 0 : i32
    %c0_i32_0 = arith.constant 0 : i32
    %c0_i32_1 = arith.constant 0 : i32
    return %c0_i32, %c0_i32_0 : i32, i32
  }
  func.func @transform_8(%arg0: i32, %arg1: i32) -> (i32, i32) {
    %c0_i32 = arith.constant 0 : i32
    %c0_i32_0 = arith.constant 0 : i32
    %c0_i32_1 = arith.constant 0 : i32
    return %c0_i32, %c0_i32_0 : i32, i32
  }
  func.func @transform_9(%arg0: i32, %arg1: i32) -> (i32, i32, i32) {
    %c0_i32 = arith.constant 0 : i32
    %c0_i32_0 = arith.constant 0 : i32
    return %arg0, %arg1, %c0_i32 : i32, i32, i32
  }
}

</mosaic_0001>

<bundles_post_ra>
// kernel: tpu_custom_call.1
= control target key start
LH: loop header
LB: loop body
LE: loop exit
PB: predicated region body
PF: predicated region fallthrough
CT: control target
= control target key end

     0   :  { %s2211_s0 = inlined_call_operand.vmem [shape: f32[2,8,128], index: 0, kind: input, shape index: {}]   ;;  %s2212_s1 = inlined_call_operand.vmem [shape: f32[128,12], index: 1, kind: input, shape index: {}]   ;;  %s2213_s2 = inlined_call_operand.vmem [shape: f32[1,12], index: 2, kind: input, shape index: {}]   ;;  %s2214_s3 = inlined_call_operand.vmem [shape: f32[128,12], index: 3, kind: input, shape index: {}]   ;;  %s2215_s4 = inlined_call_operand.vmem [shape: f32[1,12], index: 4, kind: input, shape index: {}]   ;;  %s2216_s5 = inlined_call_operand.vmem [shape: f32[128,12], index: 5, kind: input, shape index: {}]   ;;  %s2217_s6 = inlined_call_operand.vmem [shape: f32[1,12], index: 6, kind: input, shape index: {}]   ;;  %s2218_s7 = inlined_call_operand.vmem [shape: f32[12,128], index: 7, kind: input, shape index: {}]   ;;  %s2219_s8 = inlined_call_operand.vmem [shape: f32[1,128], index: 8, kind: input, shape index: {}]   ;;  %s2220_s9 = inlined_call_operand.hbm [shape: f32[2,8,128], index: 9, kind: output, shape index: {}]  }
   0x1   :  { %2221 = sst [smem:[#allocation8_spill]] %s2214_s3 }
   0x2   :  { %14 = vsyncpa [#allocation6], 0 }
   0x3   :  { %16 = vsyncpa [#allocation6 + $0x1], 0  ;;  %s1847_s30 = smov 0   ;;  %s1849_s10 = smov 0  }
   0x4   :  { %s1851_s11 = smov 0   ;;  %s1853_s12 = smov 0  }
   0x5   :  { %s1855_s13 = smov 0   ;;  %s1857_s14 = smov 0  }
   0x6 LB: > { %s1323_s15 = sadd.s32 4294967295, %s1786_s14   ;;  %s1324_s16 = sadd.s32 4294967294, %s1786_s14   ;;  %s1786_s14 = sphi %s1857_s14, %s22_s14   ;;  %s1782_s13 = sphi %s1855_s13, %s2229_s13   ;;  %s1778_s12 = sphi %s1853_s12, %s2228_s12   ;;  %s1774_s11 = sphi %s1851_s11, %s2227_s11   ;;  %s1770_s10 = sphi %s1849_s10, %s2226_s10   ;;  %s1766_s30 = sphi %s1847_s30, %s2225_s30  }
   0x7   : > { %s34_s17 = sadd.s32 1, %s1782_s13  ;;  %s237_s18 = sadd.s32 1, %s1774_s11 }
   0x8   : > { %p36_p0 = scmp.ge.s32.totalorder %s34_s17, 2  ;;  %p247_p1 = scmp.ne.s32.totalorder %s1774_s11, %s1770_s10 }
   0x9   : > { %p248_p2 = scmp.eq.s32.totalorder %s1323_s15, 1  ;;  %p253_p3 = scmp.ne.s32.totalorder %s1770_s10, %s1766_s30 }
   0xa   : > { %s2231_s17 = smov (%p36_p0, %s34_s17), 0  ;;  %p254_p5 = scmp.eq.s32.totalorder %s1324_s16, 1 }
   0xb   : > { %p1887_p4 = por %p248_p2, %p247_p1  ;;  %s232_s20 = ssub.s32 %s1782_s13, %s2231_s17 }
   0xc   : > { %p1327_p6 = scmp.ge.s32.totalorder %s1786_s14, 1  ;;  %p235_p7 = scmp.eq.s32.totalorder %s232_s20, 0 }
   0xd   : > { %p1894_p8 = por %p254_p5, %p253_p3  ;;  %p303_p9 = scmp.lt.s32.totalorder %s1786_s14, 3 }
   0xe   : > { %s1900_s22 = scalar_select %p235_p7, %s1774_s11, %s237_s18  }
   0xf   : > { %p304_p10 = pnand %p1327_p6, %p303_p9 }
  0x10   : > { %s2224_s3 = sld [smem:[#allocation8_spill]] (!%p304_p10)  ;;  %v1788_v3 = vmov (!%p304_p10), 0.0|0.0   ;;  %vm1789_vm0 = vmmov (!%p304_p10), 0   ;;  %v1790_v6 = vmov (!%p304_p10), 0.0   ;;  %v440_v14 = vld [vmem:[%s2216_s5] sm:$0xff] (!%p304_p10)  ;;  %v441_v15 = vld [vmem:[%s2216_s5 + $0x8] sm:$0xff] (!%p304_p10) }
  0x11   : > { %307 = sbr.rel (%p304_p10) target bundleno = 2456 (0x998), region = 56  ;;  %1557 = vmatprep.subr.bf16.mxu0 (!%p304_p10), %v1788_v3  ;;  %1447 = vmatprep.mubr.msk.f32.mxu0 (!%p304_p10), %vm1789_vm0, %v1790_v6  ;;  %v442_v16 = vld [vmem:[%s2216_s5 + $0x10] sm:$0xff] (!%p304_p10)  ;;  %v1582_v19 = vpack.c.bf16 (!%p304_p10), %v441_v15, %v440_v14  ;;  %v443_v20 = vld [vmem:[%s2216_s5 + $0x18] sm:$0xff] (!%p304_p10)  ;;  %v444_v23 = vld [vmem:[%s2216_s5 + $0x20] sm:$0xff] (!%p304_p10)  ;;  %p338_p11 = scmp.lt.s32.totalorder (!%p304_p10), %s1778_s12, 1  ;;  %vm533_vm1 = vcmask (!%p304_p10), 97280  }
  0x12   : > { %1581 = vmatprep.subr.bf16.mxu1 (!%p304_p10), %v1788_v3  ;;  %1482 = vmatprep.mubr.msk.f32.mxu1 (!%p304_p10), %vm1789_vm0, %v1790_v6  ;;  %v1585_v21 = vpack.c.bf16 (!%p304_p10), %v443_v20, %v442_v16  ;;  %v445_v24 = vld [vmem:[%s2216_s5 + $0x28] sm:$0xff] (!%p304_p10)  ;;  %v446_v29 = vld [vmem:[%s2216_s5 + $0x30] sm:$0xff] (!%p304_p10)  ;;  %v447_v30 = vld [vmem:[%s2216_s5 + $0x38] sm:$0xff] (!%p304_p10)  ;;  %vm638_vm2 = vcmask (!%p304_p10), 31744   ;;  %vm718_vm4 = vcmask (!%p304_p10), 64512   ;;  %s1792_s28 = smov (!%p304_p10), 120  }
  0x13   : > { %1583 = vmatpush3.bf16.msra.mxu1 (!%p304_p10), %v1582_v19  ;;  %v1588_v27 = vpack.c.bf16 (!%p304_p10), %v445_v24, %v444_v23  ;;  %v1591_v33 = vpack.c.bf16 (!%p304_p10), %v447_v30, %v446_v29  ;;  %v448_v35 = vld [vmem:[%s2216_s5 + $0x40] sm:$0xff] (!%p304_p10)  ;;  %v449_v36 = vld [vmem:[%s2216_s5 + $0x48] sm:$0xff] (!%p304_p10)  ;;  %v450_v41 = vld [vmem:[%s2216_s5 + $0x50] sm:$0xff] (!%p304_p10)  ;;  %vm975_vm5 = vcmask (!%p304_p10), 64544   ;;  %vm1163_vm6 = vcmask (!%p304_p10), 1043456   ;;  %s1795_s24 = smov (!%p304_p10), 8  }
  0x14   : > { %1584 = vmatprep.subr.bf16.mxu1 (!%p304_p10), %v1788_v3  ;;  %v1594_v39 = vpack.c.bf16 (!%p304_p10), %v449_v36, %v448_v35  ;;  %v451_v42 = vld [vmem:[%s2216_s5 + $0x58] sm:$0xff] (!%p304_p10)  ;;  %v539_v43 = vld [vmem:[%s2212_s1] sm:$0xff] (!%p304_p10)  ;;  %v540_v44 = vld [vmem:[%s2212_s1 + $0x8] sm:$0xff] (!%p304_p10)  ;;  %vm1794_vm7 = vmmov (!%p304_p10), 1   ;;  %vm1147_vm9 = vcmask (!%p304_p10), 97344   ;;  %s1346_s27 = sshll.u32 (!%p304_p10), %s1778_s12, 7 }
  0x15   : > { %v1597_v45 = vpack.c.bf16 (!%p304_p10), %v451_v42, %v450_v41  ;;  %v1606_v47 = vpack.c.bf16 (!%p304_p10), %v540_v44, %v539_v43  ;;  %v452_v48 = vld [vmem:[%s2216_s5 + $0x60] sm:$0xff] (!%p304_p10)  ;;  %v453_v49 = vld [vmem:[%s2216_s5 + $0x68] sm:$0xff] (!%p304_p10)  ;;  %v541_v50 = vld [vmem:[%s2212_s1 + $0x10] sm:$0xff] (!%p304_p10)  ;;  %s2164_s16 = scalar_lea.hbm (!%p304_p10), %s2220_s9, %s1346_s27 }
  0x16   : > { %v347_v0 = vld [vmem:[%s2224_s3] sm:$0xff] (!%p304_p10)  ;;  %v348_v1 = vld [vmem:[%s2224_s3 + $0x8] sm:$0xff] (!%p304_p10)  ;;  %v349_v2 = vld [vmem:[%s2224_s3 + $0x10] sm:$0xff] (!%p304_p10)  ;;  %v1600_v52 = vpack.c.bf16 (!%p304_p10), %v453_v49, %v452_v48 }
  0x17   : > { %v1558_v4 = vpack.c.bf16 (!%p304_p10), %v348_v1, %v347_v0  ;;  %v350_v5 = vld [vmem:[%s2224_s3 + $0x18] sm:$0xff] (!%p304_p10)  ;;  %v351_v8 = vld [vmem:[%s2224_s3 + $0x20] sm:$0xff] (!%p304_p10)  ;;  %v352_v9 = vld [vmem:[%s2224_s3 + $0x28] sm:$0xff] (!%p304_p10)  ;;  %1586 = vmatpush3.bf16.msra.mxu1 (!%p304_p10), %v1585_v21 }
  0x18   : > { %v1561_v7 = vpack.c.bf16 %v350_v5, %v349_v2  ;;  %v1564_v10 = vpack.c.bf16 %v352_v9, %v351_v8  ;;  %v353_v11 = vld [vmem:[%s2224_s3 + $0x30] sm:$0xff]  ;;  %v354_v12 = vld [vmem:[%s2224_s3 + $0x38] sm:$0xff]  ;;  %v355_v17 = vld [vmem:[%s2224_s3 + $0x40] sm:$0xff]  ;;  %1587 = vmatprep.subr.bf16.mxu1 %v1788_v3  ;;  %s339_s23 = scalar_select %p338_p11, %s1778_s12, 1 }
  0x19   : > { %1559 = vmatpush3.bf16.msra.mxu0 %v1558_v4  ;;  %v1567_v13 = vpack.c.bf16 %v354_v12, %v353_v11  ;;  %v356_v18 = vld [vmem:[%s2224_s3 + $0x48] sm:$0xff]  ;;  %v357_v25 = vld [vmem:[%s2224_s3 + $0x50] sm:$0xff]  ;;  %v358_v26 = vld [vmem:[%s2224_s3 + $0x58] sm:$0xff]  ;;  %s1796_s12 = smov [#allocation5]  }
  0x1a   : > { %1560 = vmatprep.subr.bf16.mxu0 %v1788_v3  ;;  %v1570_v22 = vpack.c.bf16 %v356_v18, %v355_v17  ;;  %v1573_v28 = vpack.c.bf16 %v358_v26, %v357_v25  ;;  %v359_v31 = vld [vmem:[%s2224_s3 + $0x60] sm:$0xff]  ;;  %v360_v32 = vld [vmem:[%s2224_s3 + $0x68] sm:$0xff]  ;;  %v361_v37 = vld [vmem:[%s2224_s3 + $0x70] sm:$0xff]  ;;  %s1329_s18 = sshll.u32 %s339_s23, 3 }
  0x1b   : > { %1589 = vmatpush3.bf16.msra.mxu1 %v1588_v27  ;;  %v1576_v34 = vpack.c.bf16 %v360_v32, %v359_v31  ;;  %v362_v38 = vld [vmem:[%s2224_s3 + $0x78] sm:$0xff]  ;;  %s341_s23 = scalar_lea.vmem %s2211_s0, %s1329_s18  ;;  %v543_v54 = vld [vmem:[%s2212_s1 + $0x20] sm:$0xff]  ;;  %v544_v55 = vld [vmem:[%s2212_s1 + $0x28] sm:$0xff]  ;;  %s1791_s18 = smov 124  }
  0x1c   : > { %1590 = vmatprep.subr.bf16.mxu1 %v1788_v3  ;;  %v1579_v40 = vpack.c.bf16 %v362_v38, %v361_v37  ;;  %v346_v46 = vld [vmem:[%s341_s23] sm:$0xff]  ;;  %v542_v51 = vld [vmem:[%s2212_s1 + $0x18] sm:$0xff]  ;;  %v1612_v56 = vpack.c.bf16 %v544_v55, %v543_v54  ;;  %v545_v57 = vld [vmem:[%s2212_s1 + $0x30] sm:$0xff]  ;;  %s1793_s23 = smov 4  }
  0x1d   : > { %1562 = vmatpush3.bf16.msra.mxu0 %v1561_v7  ;;  %v1609_v53 = vpack.c.bf16 %v542_v51, %v541_v50  ;;  %v546_v58 = vld [vmem:[%s2212_s1 + $0x38] sm:$0xff]  ;;  %v547_v60 = vld [vmem:[%s2212_s1 + $0x40] sm:$0xff]  ;;  %v548_v61 = vld [vmem:[%s2212_s1 + $0x48] sm:$0xff] }
  0x1e   : > { %1563 = vmatprep.subr.bf16.mxu0 %v1788_v3  ;;  %v1615_v59 = vpack.c.bf16 %v546_v58, %v545_v57  ;;  %v1618_v62 = vpack.c.bf16 %v548_v61, %v547_v60  ;;  %v549_v63 = vld [vmem:[%s2212_s1 + $0x50] sm:$0xff]  ;;  %v550_v0 = vld [vmem:[%s2212_s1 + $0x58] sm:$0xff]  ;;  %v551_v2 = vld [vmem:[%s2212_s1 + $0x60] sm:$0xff] }
  0x1f   : > { %1592 = vmatpush3.bf16.msra.mxu1 %v1591_v33  ;;  %v1621_v1 = vpack.c.bf16 %v550_v0, %v549_v63  ;;  %v552_v4 = vld [vmem:[%s2212_s1 + $0x68] sm:$0xff]  ;;  %v553_v7 = vld [vmem:[%s2212_s1 + $0x70] sm:$0xff]  ;;  %v554_v8 = vld [vmem:[%s2212_s1 + $0x78] sm:$0xff] }
  0x20   : > { %1593 = vmatprep.subr.bf16.mxu1 %v1788_v3  ;;  %v1624_v5 = vpack.c.bf16 %v552_v4, %v551_v2  ;;  %v1627_v9 = vpack.c.bf16 %v554_v8, %v553_v7  ;;  %v455_v11 = vld [vmem:[%s2216_s5 + $0x78] sm:$0xff]  ;;  %v1332_v18 = vld [vmem:[%s2213_s2] ss:$0 sm:$0xff]  ;;  %vm1631_vm8 = vmpackc.low %vm1163_vm6, %vm1794_vm7 }
  0x21   : > { %1565 = vmatpush3.bf16.msra.mxu0 %v1564_v10  ;;  %v454_v10 = vld [vmem:[%s2216_s5 + $0x70] sm:$0xff]  ;;  %v1331_v23 = vld [vmem:[%s2217_s6] ss:$0 sm:$0xff] }
  0x22   : > { %1566 = vmatprep.subr.bf16.mxu0 %v1788_v3  ;;  %v1603_v12 = vpack.c.bf16 %v455_v11, %v454_v10 }
  0x23   : > { %1595 = vmatpush3.bf16.msra.mxu1 %v1594_v39 }
  0x24   : > { %1596 = vmatprep.subr.bf16.mxu1 %v1788_v3 }
  0x25   : > { %1568 = vmatpush3.bf16.msra.mxu0 %v1567_v13  ;;  %v1330_v13 = vld [vmem:[%s2215_s4] ss:$0 sm:$0xff] }
  0x26   : > { %1569 = vmatprep.subr.bf16.mxu0 %v1788_v3 }
  0x27   : > { %1598 = vmatpush3.bf16.msra.mxu1 %v1597_v45 }
  0x28   : > { %1599 = vmatprep.subr.bf16.mxu1 %v1788_v3 }
  0x29   : > { %1571 = vmatpush3.bf16.msra.mxu0 %v1570_v22 }
  0x2a   : > { %1572 = vmatprep.subr.bf16.mxu0 %v1788_v3 }
  0x2b   : > { %1601 = vmatpush3.bf16.msra.mxu1 %v1600_v52 }
  0x2c   : > { %1602 = vmatprep.subr.bf16.mxu1 %v1788_v3 }
  0x2d   : > { %1574 = vmatpush3.bf16.msra.mxu0 %v1573_v28  ;;  %v635_v28 = vlaneseq }
  0x2e   : > { %1575 = vmatprep.subr.bf16.mxu0 %v1788_v3 }
  0x2f   : > { %1604 = vmatpush3.bf16.msra.mxu1 %v1603_v12  ;;  %v2106_v29 = vand.u32 127, %v635_v28 }
  0x30   : > { %1520 = vmatprep.subr.mxu1 %v1790_v6 }
  0x31   : > { %1577 = vmatpush3.bf16.msra.mxu0 %v1576_v34  ;;  %vm637_vm3 = vcmp.lt.s32.totalorder %v2106_v29, 5 }
  0x32   : > { %1578 = vmatprep.subr.bf16.mxu0 %v1788_v3  ;;  %1483 = vmatmul.mubr.f32.vlgmr.msra.gmra.mrb[0].mxu1 %v346_v46 }
  0x33   : > { %1522 = vmatprep.mubr.msk.f32.mxu1 %vm1789_vm0, %v1790_v6 }
  0x35   : > { %1580 = vmatpush3.bf16.msra.mxu0 %v1579_v40 }
  0x36   : > { %1605 = vmatprep.subr.bf16.mxu0 %v1788_v3 }
  0x38   : > { %1448 = vmatmul.mubr.f32.vlgmr.msra.gmra.mrb[0].mxu0 %v346_v46 }
  0x39   : > { %1607 = vmatpush3.bf16.msra.mxu0 %v1606_v47  ;;  %1517 = vmatprep.mubr.msk.f32.mxu0 %vm1789_vm0, %v1790_v6 }
  0x3a   : > { %1608 = vmatprep.subr.bf16.mxu0 %v1788_v3 }
  0x3d   : > { %1610 = vmatpush3.bf16.msra.mxu0 %v1609_v53 }
  0x3e   : > { %1611 = vmatprep.subr.bf16.mxu0 %v1788_v3 }
  0x41   : > { %1613 = vmatpush3.bf16.msra.mxu0 %v1612_v56 }
  0x42   : > { %1614 = vmatprep.subr.bf16.mxu0 %v1788_v3 }
  0x45   : > { %1616 = vmatpush3.bf16.msra.mxu0 %v1615_v59 }
  0x46   : > { %1617 = vmatprep.subr.bf16.mxu0 %v1788_v3 }
  0x49   : > { %1619 = vmatpush3.bf16.msra.mxu0 %v1618_v62 }
  0x4a   : > { %1620 = vmatprep.subr.bf16.mxu0 %v1788_v3 }
  0x4d   : > { %1622 = vmatpush3.bf16.msra.mxu0 %v1621_v1 }
  0x4e   : > { %1623 = vmatprep.subr.bf16.mxu0 %v1788_v3 }
  0x51   : > { %1625 = vmatpush3.bf16.msra.mxu0 %v1624_v5 }
  0x52   : > { %1626 = vmatprep.subr.bf16.mxu0 %v1788_v3 }
  0x55   : > { %1628 = vmatpush3.bf16.msra.mxu0 %v1627_v9 }
  0x58   : > { %1518 = vmatmul.mubr.f32.vlgmr.msra.gmra.mrb[2].mxu0 %v346_v46 }
 0x105   : > { %v529_v24 = vpop.f32.mrb[0].mxu1 }
 0x106   : > { %v530_v25 = vadd.f32 %v1331_v23, %v529_v24  ;;  %v1484_v26 = vpop.f32.mrb[1].mxu1 }
 0x108   : > { %535 = vst.msk [vmem:[#allocation3] sm:$0xff] %vm533_vm1, %v530_v25 }
 0x10b   : > { %v436_v14 = vpop.f32.mrb[0].mxu0 }
 0x10c   : > { %v437_v15 = vadd.f32 %v1330_v13, %v436_v14  ;;  %v1449_v16 = vpop.f32.mrb[1].mxu0 }
 0x10d   : > { %v1151_v16 = vld [vmem:[%s2218_s7 + $0x8] sm:$0xf] }
 0x10e   : > { %534 = vst.msk [vmem:[#allocation2] sm:$0xff] %vm533_vm1, %v437_v15  ;;  %v1150_v15 = vld [vmem:[%s2218_s7] sm:$0xff] }
 0x10f   : > { %v2102_v27 = vld [vmem:[#allocation3] sm:$0xff] }
 0x115   : > { %v633_v17 = vld [vmem:[#allocation2] sm:$0xff] }
 0x116   : > { %806 = vrot.lane.b32.xlu1 %v633_v17, %s1791_s18  ;;  %1521 = vmatpush3.xpose.msk.msra.mxu1 %vm638_vm2, %v633_v17 }
 0x117   : > { %1525 = vmatprep.subr.mxu1 %v1790_v6 }
 0x12b   : > { %v628_v19 = vpop.f32.mrb[2].mxu0 }
 0x12c   : > { %v629_v20 = vadd.f32 %v1332_v18, %v628_v19  ;;  %v1519_v21 = vpop.f32.mrb[3].mxu0 }
 0x12e   : > { %v632_v22 = vmul.f32 0.5, %v629_v20  ;;  %v1342_v20 = vld [vmem:[%s2219_s8] ss:$0 sm:$0xff] }
 0x130   : > { %804 = vrot.lane.b32.xlu1 %v632_v22, %s1791_s18  ;;  %1523 = vmatmul.mubr.msk.f32.vlgmr.msra.gmra.mrb[2].mxu1 %vm638_vm2, %v632_v22 }
 0x131   : > { %1527 = vmatprep.mubr.msk.f32.mxu1 %vm1789_vm0, %v1790_v6  ;;  %1526 = vmatpush3.msra.mxu1 %v2102_v27 }
 0x132   : > { %1530 = vmatprep.subr.mxu1 %v1790_v6 }
 0x188   : > { %v807_v42 = vpop.permute.xlu1 %806 }
 0x1a2   : > { %v805_v43 = vpop.permute.xlu1 %804 }
 0x203   : > { %v711_v30 = vpop.f32.mrb[2].mxu1 }
 0x204   : > { %v717_v31 = vsel %vm637_vm3, %v711_v30, -1e+30  ;;  %v1524_v32 = vpop.f32.mrb[3].mxu1 }
 0x205   : > { %v719_v33 = vsel %vm718_vm4, %v717_v31, -inf }
 0x206   : > { %720 = vmax.xlane.f32.xlu0 %v719_v33 }
 0x293   : > { %v721_v34 = vpop.xlane.xlu0 %720 }
 0x294   : > { %v722_v35 = vsub.f32 %v717_v31, %v721_v34 }
 0x296   : > { %v723_v36 = vmul.f32 1.442695, %v722_v35 }
 0x298   : > { %1696 = vpow2.f32 %v723_v36 }
 0x2a2   : > { %v1697_v37 = vpop.eup %1696 }
 0x2a3   : > { %v725_v38 = vsel %vm718_vm4, %v1697_v37, 0.0 }
 0x2a4   : > { %726 = vadd.xlane.f32.xlu0 %v725_v38 }
 0x331   : > { %v727_v39 = vpop.xlane.xlu0 %726 }
 0x332   : > { %1698 = vrcp.f32 %v727_v39 }
 0x33c   : > { %v1699_v40 = vpop.eup %1698 }
 0x33d   : > { %v729_v41 = vmul.f32 %v1699_v40, %v1697_v37 }
 0x33f   : > { %1528 = vmatmul.mubr.msk.f32.vlgmr.msra.gmra.mrb[4].mxu1 %vm718_vm4, %v729_v41 }
 0x340   : > { %1531 = vmatpush3.xpose.msk.msra.mxu1 %vm638_vm2, %v807_v42  ;;  %1532 = vmatprep.mubr.msk.f32.mxu1 %vm1789_vm0, %v1790_v6 }
 0x341   : > { %1535 = vmatprep.subr.mxu1 %v1790_v6 }
 0x343   : > { %1533 = vmatmul.mubr.msk.f32.vlgmr.msra.gmra.mrb[6].mxu1 %vm638_vm2, %v805_v43 }
 0x344   : > { %1537 = vmatprep.mubr.msk.f32.mxu1 %vm1789_vm0, %v1790_v6 }
 0x412   : > { %v799_v44 = vpop.f32.mrb[4].mxu1 }
 0x413   : > { %803 = vst.msk [vmem:[#allocation4] sm:$0xff] %vm638_vm2, %v799_v44  ;;  %v1529_v45 = vpop.f32.mrb[5].mxu1 }
 0x416   : > { %v878_v46 = vpop.f32.mrb[6].mxu1 }
 0x417   : > { %v882_v47 = vsel %vm637_vm3, %v878_v46, -1e+30  ;;  %v1534_v48 = vpop.f32.mrb[7].mxu1 }
 0x418   : > { %v883_v49 = vsel %vm718_vm4, %v882_v47, -inf }
 0x419   : > { %884 = vmax.xlane.f32.xlu0 %v883_v49 }
 0x42f   : > { %895 = vrot.lane.b32.xlu0 %v2102_v27, %s1791_s18  ;;  %s335_s18 = sand.u32 1, %s1770_s10  }
 0x430   : > { %s1328_s25 = sshll.u32 %s335_s18, 3  ;;  %s1239_s20 = scalar_lea.sflag [#allocation6], %s335_s18 }
 0x433   : > { %979 = vrot.lane.b32.xlu0 %v633_v17, %s1792_s28 }
 0x437   : > { %977 = vrot.lane.b32.xlu0 %v632_v22, %s1792_s28 }
 0x4a6   : > { %v885_v50 = vpop.xlane.xlu0 %884 }
 0x4a7   : > { %v886_v51 = vsub.f32 %v882_v47, %v885_v50 }
 0x4a9   : > { %v887_v52 = vmul.f32 1.442695, %v886_v51 }
 0x4aa   : > { %v896_v53 = vpop.permute.xlu0 %895 }
 0x4ab   : > { %1700 = vpow2.f32 %v887_v52  ;;  %1536 = vmatpush3.msra.mxu1 %v896_v53 }
 0x4ac   : > { %1540 = vmatprep.subr.mxu1 %v1790_v6 }
 0x4ae   : > { %v980_v58 = vpop.permute.xlu0 %979 }
 0x4b2   : > { %v978_v60 = vpop.permute.xlu0 %977 }
 0x4b5   : > { %v1701_v54 = vpop.eup %1700 }
 0x4b6   : > { %v889_v55 = vsel %vm718_vm4, %v1701_v54, 0.0 }
 0x4b7   : > { %890 = vadd.xlane.f32.xlu1 %v889_v55 }
 0x544   : > { %v891_v56 = vpop.xlane.xlu1 %890 }
 0x545   : > { %1702 = vrcp.f32 %v891_v56 }
 0x54f   : > { %v1703_v57 = vpop.eup %1702 }
 0x550   : > { %v893_v59 = vmul.f32 %v1703_v57, %v1701_v54 }
 0x552   : > { %1538 = vmatmul.mubr.msk.f32.vlgmr.msra.gmra.mrb[8].mxu1 %vm718_vm4, %v893_v59 }
 0x553   : > { %1541 = vmatpush3.xpose.msk.msra.mxu1 %vm638_vm2, %v980_v58  ;;  %1542 = vmatprep.mubr.msk.f32.mxu1 %vm1789_vm0, %v1790_v6 }
 0x554   : > { %1545 = vmatprep.subr.mxu1 %v1790_v6 }
 0x556   : > { %1543 = vmatmul.mubr.msk.f32.vlgmr.msra.gmra.mrb[10].mxu1 %vm638_vm2, %v978_v60 }
 0x557   : > { %1547 = vmatprep.mubr.msk.f32.mxu1 %vm1789_vm0, %v1790_v6 }
 0x625   : > { %v967_v61 = vpop.f32.mrb[8].mxu1 }
 0x626   : > { %v1539_v62 = vpop.f32.mrb[9].mxu1 }
 0x629   : > { %v1051_v63 = vpop.f32.mrb[10].mxu1 }
 0x62a   : > { %v1055_v0 = vsel %vm637_vm3, %v1051_v63, -1e+30  ;;  %v1544_v1 = vpop.f32.mrb[11].mxu1 }
 0x62b   : > { %v1056_v2 = vsel %vm718_vm4, %v1055_v0, -inf }
 0x62c   : > { %1057 = vmax.xlane.f32.xlu0 %v1056_v2 }
 0x6b9   : > { %v1058_v4 = vpop.xlane.xlu0 %1057 }
 0x6ba   : > { %v1059_v5 = vsub.f32 %v1055_v0, %v1058_v4 }
 0x6bc   : > { %v1060_v7 = vmul.f32 1.442695, %v1059_v5 }
 0x6be   : > { %1704 = vpow2.f32 %v1060_v7 }
 0x6c8   : > { %v1705_v8 = vpop.eup %1704 }
 0x6c9   : > { %v1062_v9 = vsel %vm718_vm4, %v1705_v8, 0.0 }
 0x6ca   : > { %1063 = vadd.xlane.f32.xlu1 %v1062_v9 }
 0x6db   : > { %1067 = vrot.lane.b32.xlu1 %v2102_v27, %s1792_s28  ;;  %s337_s28 = scalar_lea.vmem [#allocation5], %s1328_s25  ;;  %s1712_s25 = sshll.u32 %s1796_s12, 4  ;;  %s1713_s25 = int_to_ptr.vmem [resolvable:$false] %s1712_s25 }
 0x6dc   : > { %s1714_s26 = scalar_lea.vmem %s1713_s25, 256 }
 0x6df   : > { %972 = vrot.lane.b32.xlu1 %v967_v61, %s1793_s23  ;;  %s1253_s23 = sshll.u32 %s337_s28, 4  ;;  %s2166_s23 = int_to_ptr.vmem [resolvable:$true] %s1253_s23 }
 0x6e0   : > { %p1715_p1 = scmp.lt.s32.totalorder %s2166_s23, %s1713_s25 }
 0x757   : > { %v1064_v10 = vpop.xlane.xlu1 %1063 }
 0x758   : > { %1706 = vrcp.f32 %v1064_v10 }
 0x75b   : > { %v1068_v11 = vpop.permute.xlu1 %1067 }
 0x75c   : > { %1546 = vmatpush3.msra.mxu1 %v1068_v11 }
 0x75d   : > { %1629 = vmatprep.subr.bf16.mxu1 %v1788_v3  ;;  %v1630_v3 = vpack.c.bf16 %v1151_v16, %v1150_v15 }
 0x75f   : > { %v973_v12 = vpop.permute.xlu1 %972 }
 0x760   : > { %976 = vst.msk [vmem:[#allocation4] sm:$0xff] %vm975_vm5, %v973_v12 }
 0x762   : > { %v1707_v13 = vpop.eup %1706 }
 0x763   : > { %v1066_v14 = vmul.f32 %v1707_v13, %v1705_v8 }
 0x765   : > { %1548 = vmatmul.mubr.msk.f32.vlgmr.msra.gmra.mrb[12].mxu1 %vm718_vm4, %v1066_v14 }
 0x766   : > { %1554 = vmatprep.mubr.msk.f32.mxu1 %vm1789_vm0, %v1790_v6  ;;  %1632 = vmatpush3.bf16.msk.msra.mxu1 %vm1631_vm8, %v1630_v3 }
 0x838   : > { %v1139_v17 = vpop.f32.mrb[12].mxu1 }
 0x839   : > { %1144 = vrot.lane.b32.xlu1 %v1139_v17, %s1795_s24  ;;  %v1549_v18 = vpop.f32.mrb[13].mxu1  ;;  %s1708_s24 = scalar_lea.vmem %s2166_s23, 128 }
 0x83a   : > { %p1709_p12 = scmp.ne.s32.totalorder %s2166_s23, %s1708_s24  ;;  %p1716_p2 = scmp.lt.s32.totalorder %s1714_s26, %s1708_s24 }
 0x83c   : > { %p1710_p13 = pnand %p1709_p12, %p1887_p4  ;;  %p1717_p3 = por %p1716_p2, %p1715_p1 }
 0x83e   : > { %p1711_p0 = pneg %p1710_p13 }
 0x840   : > { %p1718_p5 = pnand %p1717_p3, %p1711_p0 }
 0x8ab   : > { %v1145_v6 = vpop.permute.xlu1 %1144 }
 0x8ac   : > { %1148 = vst.msk [vmem:[#allocation4] sm:$0xff] %vm1147_vm9, %v1145_v6 }
 0x8b3   : > { %v1149_v19 = vld [vmem:[#allocation4] sm:$0xff] }
 0x8b4   : > { %1555 = vmatmul.mubr.msk.f32.vlgmr.msra.gmra.mrb[14].mxu1 %vm533_vm1, %v1149_v19 }
 0x987   : > { %v1233_v21 = vpop.f32.mrb[14].mxu1 }
 0x988   : > { %v1234_v22 = vadd.f32 %v1342_v20, %v1233_v21  ;;  %v1556_v23 = vpop.f32.mrb[15].mxu1 }
 0x98a   : > { %1237 = vst [vmem:[%s337_s28] sm:$0xff] %v1234_v22 }
 0x98b   : > { %1721 = shalt.err (!%p1718_p5)
}
 0x98c   : > { %s1722_s18 = scalar_lea.hbm %s2164_s16, 128  ;;  %s1726_s28 = scalar_lea.hbm %s2220_s9, 256 }
 0x98d   : > { %p1723_p6 = scmp.ne.s32.totalorder %s2164_s16, %s1722_s18  ;;  %p1727_p10 = scmp.lt.u32.totalorder %s2164_s16, %s2220_s9 }
 0x98e   : > { %p1728_p11 = scmp.lt.u32.totalorder %s1726_s28, %s1722_s18  ;;  %p1730_p13 = scmp.lt.u32.totalorder %s1722_s18, %s2164_s16 }
 0x98f   : > { %p1724_p7 = pnand %p1723_p6, %p1887_p4 }
 0x990   : > { %p1729_p12 = por %p1728_p11, %p1727_p10 }
 0x991   : > { %p1725_p9 = pneg %p1724_p7 }
 0x992   : > { %p1731_p0 = por %p1730_p13, %p1729_p12 }
 0x994   : > { %p1732_p1 = pnand %p1731_p0, %p1725_p9 }
 0x996   : > { %1735 = shalt.err (!%p1732_p1)
}
 0x997   : > { %1633 = dma.vmem_to_hbm [thread:$0]  (%p1887_p4), %s2166_s23, 128, %s2164_s16, %s1239_s20  }
 0x998 PF: > { %p1639_p2 = scmp.ge.s32.totalorder %s1786_s14, 2  ;;  %s1265_s24 = sand.u32 1, %s1766_s30  }
 0x999   : > { %s1266_s12 = scalar_lea.sflag [#allocation6], %s1265_s24 }
 0x99a   : > { %p1636_p3 = pnand %p1639_p2, %p1894_p8 }
 0x99c   : > { %1761 = dma.done.wait (!%p1636_p3), %s1266_s12, 128  }
 0x99d   : > { %1763 = vsyncadd (!%p1636_p3), %s1266_s12, 4294967168  ;;  %s22_s14 = sadd.s32 1, %s1786_s14   ;;  %s2225_s30 = smov %s1770_s10 }
 0x99e   : > { %p19_p5 = scmp.ge.s32.totalorder %s22_s14, 4   ;;  %s2226_s10 = smov %s1774_s11 }
 0x99f   : > { %s2227_s11 = smov %s1900_s22  ;;  %s2228_s12 = smov %s1782_s13 }
 0x9a0   : > { %s2229_s13 = smov %s2231_s17  ;;  %21 = sbr.rel (!%p19_p5) target bundleno = 6 (0x6), region = 96 }
 0x9a7   :  { %1271 = vsyncpa [#allocation6], 1 }
 0x9a8   :  { %1273 = vsyncpa [#allocation6 + $0x1], 1 }

// kernel: tpu_custom_call.1
= control target key start
LH: loop header
LB: loop body
LE: loop exit
PB: predicated region body
PF: predicated region fallthrough
CT: control target
= control target key end

     0   :  { %s2211_s0 = inlined_call_operand.vmem [shape: f32[2,8,128], index: 0, kind: input, shape index: {}]   ;;  %s2212_s1 = inlined_call_operand.vmem [shape: f32[128,12], index: 1, kind: input, shape index: {}]   ;;  %s2213_s2 = inlined_call_operand.vmem [shape: f32[1,12], index: 2, kind: input, shape index: {}]   ;;  %s2214_s3 = inlined_call_operand.vmem [shape: f32[128,12], index: 3, kind: input, shape index: {}]   ;;  %s2215_s4 = inlined_call_operand.vmem [shape: f32[1,12], index: 4, kind: input, shape index: {}]   ;;  %s2216_s5 = inlined_call_operand.vmem [shape: f32[128,12], index: 5, kind: input, shape index: {}]   ;;  %s2217_s6 = inlined_call_operand.vmem [shape: f32[1,12], index: 6, kind: input, shape index: {}]   ;;  %s2218_s7 = inlined_call_operand.vmem [shape: f32[12,128], index: 7, kind: input, shape index: {}]   ;;  %s2219_s8 = inlined_call_operand.vmem [shape: f32[1,128], index: 8, kind: input, shape index: {}]   ;;  %s2220_s9 = inlined_call_operand.hbm [shape: f32[2,8,128], index: 9, kind: output, shape index: {}]  }
   0x1   :  { %2221 = sst [smem:[#allocation8_spill]] %s2214_s3 }
   0x2   :  { %14 = vsyncpa [#allocation6], 0 }
   0x3   :  { %16 = vsyncpa [#allocation6 + $0x1], 0  ;;  %s1847_s30 = smov 0   ;;  %s1849_s10 = smov 0  }
   0x4   :  { %s1851_s11 = smov 0   ;;  %s1853_s12 = smov 0  }
   0x5   :  { %s1855_s13 = smov 0   ;;  %s1857_s14 = smov 0  }
   0x6 LB: > { %s1323_s15 = sadd.s32 4294967295, %s1786_s14   ;;  %s1324_s16 = sadd.s32 4294967294, %s1786_s14   ;;  %s1786_s14 = sphi %s1857_s14, %s22_s14   ;;  %s1782_s13 = sphi %s1855_s13, %s2229_s13   ;;  %s1778_s12 = sphi %s1853_s12, %s2228_s12   ;;  %s1774_s11 = sphi %s1851_s11, %s2227_s11   ;;  %s1770_s10 = sphi %s1849_s10, %s2226_s10   ;;  %s1766_s30 = sphi %s1847_s30, %s2225_s30  }
   0x7   : > { %s34_s17 = sadd.s32 1, %s1782_s13  ;;  %s237_s18 = sadd.s32 1, %s1774_s11 }
   0x8   : > { %p36_p0 = scmp.ge.s32.totalorder %s34_s17, 2  ;;  %p247_p1 = scmp.ne.s32.totalorder %s1774_s11, %s1770_s10 }
   0x9   : > { %p248_p2 = scmp.eq.s32.totalorder %s1323_s15, 1  ;;  %p253_p3 = scmp.ne.s32.totalorder %s1770_s10, %s1766_s30 }
   0xa   : > { %s2231_s17 = smov (%p36_p0, %s34_s17), 0  ;;  %p254_p5 = scmp.eq.s32.totalorder %s1324_s16, 1 }
   0xb   : > { %p1887_p4 = por %p248_p2, %p247_p1  ;;  %s232_s20 = ssub.s32 %s1782_s13, %s2231_s17 }
   0xc   : > { %p1327_p6 = scmp.ge.s32.totalorder %s1786_s14, 1  ;;  %p235_p7 = scmp.eq.s32.totalorder %s232_s20, 0 }
   0xd   : > { %p1894_p8 = por %p254_p5, %p253_p3  ;;  %p303_p9 = scmp.lt.s32.totalorder %s1786_s14, 3 }
   0xe   : > { %s1900_s22 = scalar_select %p235_p7, %s1774_s11, %s237_s18  }
   0xf   : > { %p304_p10 = pnand %p1327_p6, %p303_p9 }
  0x10   : > { %s2224_s3 = sld [smem:[#allocation8_spill]] (!%p304_p10)  ;;  %v1788_v3 = vmov (!%p304_p10), 0.0|0.0   ;;  %vm1789_vm0 = vmmov (!%p304_p10), 0   ;;  %v1790_v6 = vmov (!%p304_p10), 0.0   ;;  %v440_v14 = vld [vmem:[%s2216_s5] sm:$0xff] (!%p304_p10)  ;;  %v441_v15 = vld [vmem:[%s2216_s5 + $0x8] sm:$0xff] (!%p304_p10) }
  0x11   : > { %307 = sbr.rel (%p304_p10) target bundleno = 2456 (0x998), region = 56  ;;  %1557 = vmatprep.subr.bf16.mxu0 (!%p304_p10), %v1788_v3  ;;  %1447 = vmatprep.mubr.msk.f32.mxu0 (!%p304_p10), %vm1789_vm0, %v1790_v6  ;;  %v442_v16 = vld [vmem:[%s2216_s5 + $0x10] sm:$0xff] (!%p304_p10)  ;;  %v1582_v19 = vpack.c.bf16 (!%p304_p10), %v441_v15, %v440_v14  ;;  %v443_v20 = vld [vmem:[%s2216_s5 + $0x18] sm:$0xff] (!%p304_p10)  ;;  %v444_v23 = vld [vmem:[%s2216_s5 + $0x20] sm:$0xff] (!%p304_p10)  ;;  %p338_p11 = scmp.lt.s32.totalorder (!%p304_p10), %s1778_s12, 1  ;;  %vm533_vm1 = vcmask (!%p304_p10), 97280  }
  0x12   : > { %1581 = vmatprep.subr.bf16.mxu1 (!%p304_p10), %v1788_v3  ;;  %1482 = vmatprep.mubr.msk.f32.mxu1 (!%p304_p10), %vm1789_vm0, %v1790_v6  ;;  %v1585_v21 = vpack.c.bf16 (!%p304_p10), %v443_v20, %v442_v16  ;;  %v445_v24 = vld [vmem:[%s2216_s5 + $0x28] sm:$0xff] (!%p304_p10)  ;;  %v446_v29 = vld [vmem:[%s2216_s5 + $0x30] sm:$0xff] (!%p304_p10)  ;;  %v447_v30 = vld [vmem:[%s2216_s5 + $0x38] sm:$0xff] (!%p304_p10)  ;;  %vm638_vm2 = vcmask (!%p304_p10), 31744   ;;  %vm718_vm4 = vcmask (!%p304_p10), 64512   ;;  %s1792_s28 = smov (!%p304_p10), 120  }
  0x13   : > { %1583 = vmatpush3.bf16.msra.mxu1 (!%p304_p10), %v1582_v19  ;;  %v1588_v27 = vpack.c.bf16 (!%p304_p10), %v445_v24, %v444_v23  ;;  %v1591_v33 = vpack.c.bf16 (!%p304_p10), %v447_v30, %v446_v29  ;;  %v448_v35 = vld [vmem:[%s2216_s5 + $0x40] sm:$0xff] (!%p304_p10)  ;;  %v449_v36 = vld [vmem:[%s2216_s5 + $0x48] sm:$0xff] (!%p304_p10)  ;;  %v450_v41 = vld [vmem:[%s2216_s5 + $0x50] sm:$0xff] (!%p304_p10)  ;;  %vm975_vm5 = vcmask (!%p304_p10), 64544   ;;  %vm1163_vm6 = vcmask (!%p304_p10), 1043456   ;;  %s1795_s24 = smov (!%p304_p10), 8  }
  0x14   : > { %1584 = vmatprep.subr.bf16.mxu1 (!%p304_p10), %v1788_v3  ;;  %v1594_v39 = vpack.c.bf16 (!%p304_p10), %v449_v36, %v448_v35  ;;  %v451_v42 = vld [vmem:[%s2216_s5 + $0x58] sm:$0xff] (!%p304_p10)  ;;  %v539_v43 = vld [vmem:[%s2212_s1] sm:$0xff] (!%p304_p10)  ;;  %v540_v44 = vld [vmem:[%s2212_s1 + $0x8] sm:$0xff] (!%p304_p10)  ;;  %vm1794_vm7 = vmmov (!%p304_p10), 1   ;;  %vm1147_vm9 = vcmask (!%p304_p10), 97344   ;;  %s1346_s27 = sshll.u32 (!%p304_p10), %s1778_s12, 7 }
  0x15   : > { %v1597_v45 = vpack.c.bf16 (!%p304_p10), %v451_v42, %v450_v41  ;;  %v1606_v47 = vpack.c.bf16 (!%p304_p10), %v540_v44, %v539_v43  ;;  %v452_v48 = vld [vmem:[%s2216_s5 + $0x60] sm:$0xff] (!%p304_p10)  ;;  %v453_v49 = vld [vmem:[%s2216_s5 + $0x68] sm:$0xff] (!%p304_p10)  ;;  %v541_v50 = vld [vmem:[%s2212_s1 + $0x10] sm:$0xff] (!%p304_p10)  ;;  %s2164_s16 = scalar_lea.hbm (!%p304_p10), %s2220_s9, %s1346_s27 }
  0x16   : > { %v347_v0 = vld [vmem:[%s2224_s3] sm:$0xff] (!%p304_p10)  ;;  %v348_v1 = vld [vmem:[%s2224_s3 + $0x8] sm:$0xff] (!%p304_p10)  ;;  %v349_v2 = vld [vmem:[%s2224_s3 + $0x10] sm:$0xff] (!%p304_p10)  ;;  %v1600_v52 = vpack.c.bf16 (!%p304_p10), %v453_v49, %v452_v48 }
  0x17   : > { %v1558_v4 = vpack.c.bf16 (!%p304_p10), %v348_v1, %v347_v0  ;;  %v350_v5 = vld [vmem:[%s2224_s3 + $0x18] sm:$0xff] (!%p304_p10)  ;;  %v351_v8 = vld [vmem:[%s2224_s3 + $0x20] sm:$0xff] (!%p304_p10)  ;;  %v352_v9 = vld [vmem:[%s2224_s3 + $0x28] sm:$0xff] (!%p304_p10)  ;;  %1586 = vmatpush3.bf16.msra.mxu1 (!%p304_p10), %v1585_v21 }
  0x18   : > { %v1561_v7 = vpack.c.bf16 %v350_v5, %v349_v2  ;;  %v1564_v10 = vpack.c.bf16 %v352_v9, %v351_v8  ;;  %v353_v11 = vld [vmem:[%s2224_s3 + $0x30] sm:$0xff]  ;;  %v354_v12 = vld [vmem:[%s2224_s3 + $0x38] sm:$0xff]  ;;  %v355_v17 = vld [vmem:[%s2224_s3 + $0x40] sm:$0xff]  ;;  %1587 = vmatprep.subr.bf16.mxu1 %v1788_v3  ;;  %s339_s23 = scalar_select %p338_p11, %s1778_s12, 1 }
  0x19   : > { %1559 = vmatpush3.bf16.msra.mxu0 %v1558_v4  ;;  %v1567_v13 = vpack.c.bf16 %v354_v12, %v353_v11  ;;  %v356_v18 = vld [vmem:[%s2224_s3 + $0x48] sm:$0xff]  ;;  %v357_v25 = vld [vmem:[%s2224_s3 + $0x50] sm:$0xff]  ;;  %v358_v26 = vld [vmem:[%s2224_s3 + $0x58] sm:$0xff]  ;;  %s1796_s12 = smov [#allocation5]  }
  0x1a   : > { %1560 = vmatprep.subr.bf16.mxu0 %v1788_v3  ;;  %v1570_v22 = vpack.c.bf16 %v356_v18, %v355_v17  ;;  %v1573_v28 = vpack.c.bf16 %v358_v26, %v357_v25  ;;  %v359_v31 = vld [vmem:[%s2224_s3 + $0x60] sm:$0xff]  ;;  %v360_v32 = vld [vmem:[%s2224_s3 + $0x68] sm:$0xff]  ;;  %v361_v37 = vld [vmem:[%s2224_s3 + $0x70] sm:$0xff]  ;;  %s1329_s18 = sshll.u32 %s339_s23, 3 }
  0x1b   : > { %1589 = vmatpush3.bf16.msra.mxu1 %v1588_v27  ;;  %v1576_v34 = vpack.c.bf16 %v360_v32, %v359_v31  ;;  %v362_v38 = vld [vmem:[%s2224_s3 + $0x78] sm:$0xff]  ;;  %s341_s23 = scalar_lea.vmem %s2211_s0, %s1329_s18  ;;  %v543_v54 = vld [vmem:[%s2212_s1 + $0x20] sm:$0xff]  ;;  %v544_v55 = vld [vmem:[%s2212_s1 + $0x28] sm:$0xff]  ;;  %s1791_s18 = smov 124  }
  0x1c   : > { %1590 = vmatprep.subr.bf16.mxu1 %v1788_v3  ;;  %v1579_v40 = vpack.c.bf16 %v362_v38, %v361_v37  ;;  %v346_v46 = vld [vmem:[%s341_s23] sm:$0xff]  ;;  %v542_v51 = vld [vmem:[%s2212_s1 + $0x18] sm:$0xff]  ;;  %v1612_v56 = vpack.c.bf16 %v544_v55, %v543_v54  ;;  %v545_v57 = vld [vmem:[%s2212_s1 + $0x30] sm:$0xff]  ;;  %s1793_s23 = smov 4  }
  0x1d   : > { %1562 = vmatpush3.bf16.msra.mxu0 %v1561_v7  ;;  %v1609_v53 = vpack.c.bf16 %v542_v51, %v541_v50  ;;  %v546_v58 = vld [vmem:[%s2212_s1 + $0x38] sm:$0xff]  ;;  %v547_v60 = vld [vmem:[%s2212_s1 + $0x40] sm:$0xff]  ;;  %v548_v61 = vld [vmem:[%s2212_s1 + $0x48] sm:$0xff] }
  0x1e   : > { %1563 = vmatprep.subr.bf16.mxu0 %v1788_v3  ;;  %v1615_v59 = vpack.c.bf16 %v546_v58, %v545_v57  ;;  %v1618_v62 = vpack.c.bf16 %v548_v61, %v547_v60  ;;  %v549_v63 = vld [vmem:[%s2212_s1 + $0x50] sm:$0xff]  ;;  %v550_v0 = vld [vmem:[%s2212_s1 + $0x58] sm:$0xff]  ;;  %v551_v2 = vld [vmem:[%s2212_s1 + $0x60] sm:$0xff] }
  0x1f   : > { %1592 = vmatpush3.bf16.msra.mxu1 %v1591_v33  ;;  %v1621_v1 = vpack.c.bf16 %v550_v0, %v549_v63  ;;  %v552_v4 = vld [vmem:[%s2212_s1 + $0x68] sm:$0xff]  ;;  %v553_v7 = vld [vmem:[%s2212_s1 + $0x70] sm:$0xff]  ;;  %v554_v8 = vld [vmem:[%s2212_s1 + $0x78] sm:$0xff] }
  0x20   : > { %1593 = vmatprep.subr.bf16.mxu1 %v1788_v3  ;;  %v1624_v5 = vpack.c.bf16 %v552_v4, %v551_v2  ;;  %v1627_v9 = vpack.c.bf16 %v554_v8, %v553_v7  ;;  %v455_v11 = vld [vmem:[%s2216_s5 + $0x78] sm:$0xff]  ;;  %v1332_v18 = vld [vmem:[%s2213_s2] ss:$0 sm:$0xff]  ;;  %vm1631_vm8 = vmpackc.low %vm1163_vm6, %vm1794_vm7 }
  0x21   : > { %1565 = vmatpush3.bf16.msra.mxu0 %v1564_v10  ;;  %v454_v10 = vld [vmem:[%s2216_s5 + $0x70] sm:$0xff]  ;;  %v1331_v23 = vld [vmem:[%s2217_s6] ss:$0 sm:$0xff] }
  0x22   : > { %1566 = vmatprep.subr.bf16.mxu0 %v1788_v3  ;;  %v1603_v12 = vpack.c.bf16 %v455_v11, %v454_v10 }
  0x23   : > { %1595 = vmatpush3.bf16.msra.mxu1 %v1594_v39 }
  0x24   : > { %1596 = vmatprep.subr.bf16.mxu1 %v1788_v3 }
  0x25   : > { %1568 = vmatpush3.bf16.msra.mxu0 %v1567_v13  ;;  %v1330_v13 = vld [vmem:[%s2215_s4] ss:$0 sm:$0xff] }
  0x26   : > { %1569 = vmatprep.subr.bf16.mxu0 %v1788_v3 }
  0x27   : > { %1598 = vmatpush3.bf16.msra.mxu1 %v1597_v45 }
  0x28   : > { %1599 = vmatprep.subr.bf16.mxu1 %v1788_v3 }
  0x29   : > { %1571 = vmatpush3.bf16.msra.mxu0 %v1570_v22 }
  0x2a   : > { %1572 = vmatprep.subr.bf16.mxu0 %v1788_v3 }
  0x2b   : > { %1601 = vmatpush3.bf16.msra.mxu1 %v1600_v52 }
  0x2c   : > { %1602 = vmatprep.subr.bf16.mxu1 %v1788_v3 }
  0x2d   : > { %1574 = vmatpush3.bf16.msra.mxu0 %v1573_v28  ;;  %v635_v28 = vlaneseq }
  0x2e   : > { %1575 = vmatprep.subr.bf16.mxu0 %v1788_v3 }
  0x2f   : > { %1604 = vmatpush3.bf16.msra.mxu1 %v1603_v12  ;;  %v2106_v29 = vand.u32 127, %v635_v28 }
  0x30   : > { %1520 = vmatprep.subr.mxu1 %v1790_v6 }
  0x31   : > { %1577 = vmatpush3.bf16.msra.mxu0 %v1576_v34  ;;  %vm637_vm3 = vcmp.lt.s32.totalorder %v2106_v29, 5 }
  0x32   : > { %1578 = vmatprep.subr.bf16.mxu0 %v1788_v3  ;;  %1483 = vmatmul.mubr.f32.vlgmr.msra.gmra.mrb[0].mxu1 %v346_v46 }
  0x33   : > { %1522 = vmatprep.mubr.msk.f32.mxu1 %vm1789_vm0, %v1790_v6 }
  0x35   : > { %1580 = vmatpush3.bf16.msra.mxu0 %v1579_v40 }
  0x36   : > { %1605 = vmatprep.subr.bf16.mxu0 %v1788_v3 }
  0x38   : > { %1448 = vmatmul.mubr.f32.vlgmr.msra.gmra.mrb[0].mxu0 %v346_v46 }
  0x39   : > { %1607 = vmatpush3.bf16.msra.mxu0 %v1606_v47  ;;  %1517 = vmatprep.mubr.msk.f32.mxu0 %vm1789_vm0, %v1790_v6 }
  0x3a   : > { %1608 = vmatprep.subr.bf16.mxu0 %v1788_v3 }
  0x3d   : > { %1610 = vmatpush3.bf16.msra.mxu0 %v1609_v53 }
  0x3e   : > { %1611 = vmatprep.subr.bf16.mxu0 %v1788_v3 }
  0x41   : > { %1613 = vmatpush3.bf16.msra.mxu0 %v1612_v56 }
  0x42   : > { %1614 = vmatprep.subr.bf16.mxu0 %v1788_v3 }
  0x45   : > { %1616 = vmatpush3.bf16.msra.mxu0 %v1615_v59 }
  0x46   : > { %1617 = vmatprep.subr.bf16.mxu0 %v1788_v3 }
  0x49   : > { %1619 = vmatpush3.bf16.msra.mxu0 %v1618_v62 }
  0x4a   : > { %1620 = vmatprep.subr.bf16.mxu0 %v1788_v3 }
  0x4d   : > { %1622 = vmatpush3.bf16.msra.mxu0 %v1621_v1 }
  0x4e   : > { %1623 = vmatprep.subr.bf16.mxu0 %v1788_v3 }
  0x51   : > { %1625 = vmatpush3.bf16.msra.mxu0 %v1624_v5 }
  0x52   : > { %1626 = vmatprep.subr.bf16.mxu0 %v1788_v3 }
  0x55   : > { %1628 = vmatpush3.bf16.msra.mxu0 %v1627_v9 }
  0x58   : > { %1518 = vmatmul.mubr.f32.vlgmr.msra.gmra.mrb[2].mxu0 %v346_v46 }
 0x105   : > { %v529_v24 = vpop.f32.mrb[0].mxu1 }
 0x106   : > { %v530_v25 = vadd.f32 %v1331_v23, %v529_v24  ;;  %v1484_v26 = vpop.f32.mrb[1].mxu1 }
 0x108   : > { %535 = vst.msk [vmem:[#allocation3] sm:$0xff] %vm533_vm1, %v530_v25 }
 0x10b   : > { %v436_v14 = vpop.f32.mrb[0].mxu0 }
 0x10c   : > { %v437_v15 = vadd.f32 %v1330_v13, %v436_v14  ;;  %v1449_v16 = vpop.f32.mrb[1].mxu0 }
 0x10d   : > { %v1151_v16 = vld [vmem:[%s2218_s7 + $0x8] sm:$0xf] }
 0x10e   : > { %534 = vst.msk [vmem:[#allocation2] sm:$0xff] %vm533_vm1, %v437_v15  ;;  %v1150_v15 = vld [vmem:[%s2218_s7] sm:$0xff] }
 0x10f   : > { %v2102_v27 = vld [vmem:[#allocation3] sm:$0xff] }
 0x115   : > { %v633_v17 = vld [vmem:[#allocation2] sm:$0xff] }
 0x116   : > { %806 = vrot.lane.b32.xlu1 %v633_v17, %s1791_s18  ;;  %1521 = vmatpush3.xpose.msk.msra.mxu1 %vm638_vm2, %v633_v17 }
 0x117   : > { %1525 = vmatprep.subr.mxu1 %v1790_v6 }
 0x12b   : > { %v628_v19 = vpop.f32.mrb[2].mxu0 }
 0x12c   : > { %v629_v20 = vadd.f32 %v1332_v18, %v628_v19  ;;  %v1519_v21 = vpop.f32.mrb[3].mxu0 }
 0x12e   : > { %v632_v22 = vmul.f32 0.5, %v629_v20  ;;  %v1342_v20 = vld [vmem:[%s2219_s8] ss:$0 sm:$0xff] }
 0x130   : > { %804 = vrot.lane.b32.xlu1 %v632_v22, %s1791_s18  ;;  %1523 = vmatmul.mubr.msk.f32.vlgmr.msra.gmra.mrb[2].mxu1 %vm638_vm2, %v632_v22 }
 0x131   : > { %1527 = vmatprep.mubr.msk.f32.mxu1 %vm1789_vm0, %v1790_v6  ;;  %1526 = vmatpush3.msra.mxu1 %v2102_v27 }
 0x132   : > { %1530 = vmatprep.subr.mxu1 %v1790_v6 }
 0x188   : > { %v807_v42 = vpop.permute.xlu1 %806 }
 0x1a2   : > { %v805_v43 = vpop.permute.xlu1 %804 }
 0x203   : > { %v711_v30 = vpop.f32.mrb[2].mxu1 }
 0x204   : > { %v717_v31 = vsel %vm637_vm3, %v711_v30, -1e+30  ;;  %v1524_v32 = vpop.f32.mrb[3].mxu1 }
 0x205   : > { %v719_v33 = vsel %vm718_vm4, %v717_v31, -inf }
 0x206   : > { %720 = vmax.xlane.f32.xlu0 %v719_v33 }
 0x293   : > { %v721_v34 = vpop.xlane.xlu0 %720 }
 0x294   : > { %v722_v35 = vsub.f32 %v717_v31, %v721_v34 }
 0x296   : > { %v723_v36 = vmul.f32 1.442695, %v722_v35 }
 0x298   : > { %1696 = vpow2.f32 %v723_v36 }
 0x2a2   : > { %v1697_v37 = vpop.eup %1696 }
 0x2a3   : > { %v725_v38 = vsel %vm718_vm4, %v1697_v37, 0.0 }
 0x2a4   : > { %726 = vadd.xlane.f32.xlu0 %v725_v38 }
 0x331   : > { %v727_v39 = vpop.xlane.xlu0 %726 }
 0x332   : > { %1698 = vrcp.f32 %v727_v39 }
 0x33c   : > { %v1699_v40 = vpop.eup %1698 }
 0x33d   : > { %v729_v41 = vmul.f32 %v1699_v40, %v1697_v37 }
 0x33f   : > { %1528 = vmatmul.mubr.msk.f32.vlgmr.msra.gmra.mrb[4].mxu1 %vm718_vm4, %v729_v41 }
 0x340   : > { %1531 = vmatpush3.xpose.msk.msra.mxu1 %vm638_vm2, %v807_v42  ;;  %1532 = vmatprep.mubr.msk.f32.mxu1 %vm1789_vm0, %v1790_v6 }
 0x341   : > { %1535 = vmatprep.subr.mxu1 %v1790_v6 }
 0x343   : > { %1533 = vmatmul.mubr.msk.f32.vlgmr.msra.gmra.mrb[6].mxu1 %vm638_vm2, %v805_v43 }
 0x344   : > { %1537 = vmatprep.mubr.msk.f32.mxu1 %vm1789_vm0, %v1790_v6 }
 0x412   : > { %v799_v44 = vpop.f32.mrb[4].mxu1 }
 0x413   : > { %803 = vst.msk [vmem:[#allocation4] sm:$0xff] %vm638_vm2, %v799_v44  ;;  %v1529_v45 = vpop.f32.mrb[5].mxu1 }
 0x416   : > { %v878_v46 = vpop.f32.mrb[6].mxu1 }
 0x417   : > { %v882_v47 = vsel %vm637_vm3, %v878_v46, -1e+30  ;;  %v1534_v48 = vpop.f32.mrb[7].mxu1 }
 0x418   : > { %v883_v49 = vsel %vm718_vm4, %v882_v47, -inf }
 0x419   : > { %884 = vmax.xlane.f32.xlu0 %v883_v49 }
 0x42f   : > { %895 = vrot.lane.b32.xlu0 %v2102_v27, %s1791_s18  ;;  %s335_s18 = sand.u32 1, %s1770_s10  }
 0x430   : > { %s1328_s25 = sshll.u32 %s335_s18, 3  ;;  %s1239_s20 = scalar_lea.sflag [#allocation6], %s335_s18 }
 0x433   : > { %979 = vrot.lane.b32.xlu0 %v633_v17, %s1792_s28 }
 0x437   : > { %977 = vrot.lane.b32.xlu0 %v632_v22, %s1792_s28 }
 0x4a6   : > { %v885_v50 = vpop.xlane.xlu0 %884 }
 0x4a7   : > { %v886_v51 = vsub.f32 %v882_v47, %v885_v50 }
 0x4a9   : > { %v887_v52 = vmul.f32 1.442695, %v886_v51 }
 0x4aa   : > { %v896_v53 = vpop.permute.xlu0 %895 }
 0x4ab   : > { %1700 = vpow2.f32 %v887_v52  ;;  %1536 = vmatpush3.msra.mxu1 %v896_v53 }
 0x4ac   : > { %1540 = vmatprep.subr.mxu1 %v1790_v6 }
 0x4ae   : > { %v980_v58 = vpop.permute.xlu0 %979 }
 0x4b2   : > { %v978_v60 = vpop.permute.xlu0 %977 }
 0x4b5   : > { %v1701_v54 = vpop.eup %1700 }
 0x4b6   : > { %v889_v55 = vsel %vm718_vm4, %v1701_v54, 0.0 }
 0x4b7   : > { %890 = vadd.xlane.f32.xlu1 %v889_v55 }
 0x544   : > { %v891_v56 = vpop.xlane.xlu1 %890 }
 0x545   : > { %1702 = vrcp.f32 %v891_v56 }
 0x54f   : > { %v1703_v57 = vpop.eup %1702 }
 0x550   : > { %v893_v59 = vmul.f32 %v1703_v57, %v1701_v54 }
 0x552   : > { %1538 = vmatmul.mubr.msk.f32.vlgmr.msra.gmra.mrb[8].mxu1 %vm718_vm4, %v893_v59 }
 0x553   : > { %1541 = vmatpush3.xpose.msk.msra.mxu1 %vm638_vm2, %v980_v58  ;;  %1542 = vmatprep.mubr.msk.f32.mxu1 %vm1789_vm0, %v1790_v6 }
 0x554   : > { %1545 = vmatprep.subr.mxu1 %v1790_v6 }
 0x556   : > { %1543 = vmatmul.mubr.msk.f32.vlgmr.msra.gmra.mrb[10].mxu1 %vm638_vm2, %v978_v60 }
 0x557   : > { %1547 = vmatprep.mubr.msk.f32.mxu1 %vm1789_vm0, %v1790_v6 }
 0x625   : > { %v967_v61 = vpop.f32.mrb[8].mxu1 }
 0x626   : > { %v1539_v62 = vpop.f32.mrb[9].mxu1 }
 0x629   : > { %v1051_v63 = vpop.f32.mrb[10].mxu1 }
 0x62a   : > { %v1055_v0 = vsel %vm637_vm3, %v1051_v63, -1e+30  ;;  %v1544_v1 = vpop.f32.mrb[11].mxu1 }
 0x62b   : > { %v1056_v2 = vsel %vm718_vm4, %v1055_v0, -inf }
 0x62c   : > { %1057 = vmax.xlane.f32.xlu0 %v1056_v2 }
 0x6b9   : > { %v1058_v4 = vpop.xlane.xlu0 %1057 }
 0x6ba   : > { %v1059_v5 = vsub.f32 %v1055_v0, %v1058_v4 }
 0x6bc   : > { %v1060_v7 = vmul.f32 1.442695, %v1059_v5 }
 0x6be   : > { %1704 = vpow2.f32 %v1060_v7 }
 0x6c8   : > { %v1705_v8 = vpop.eup %1704 }
 0x6c9   : > { %v1062_v9 = vsel %vm718_vm4, %v1705_v8, 0.0 }
 0x6ca   : > { %1063 = vadd.xlane.f32.xlu1 %v1062_v9 }
 0x6db   : > { %1067 = vrot.lane.b32.xlu1 %v2102_v27, %s1792_s28  ;;  %s337_s28 = scalar_lea.vmem [#allocation5], %s1328_s25  ;;  %s1712_s25 = sshll.u32 %s1796_s12, 4  ;;  %s1713_s25 = int_to_ptr.vmem [resolvable:$false] %s1712_s25 }
 0x6dc   : > { %s1714_s26 = scalar_lea.vmem %s1713_s25, 256 }
 0x6df   : > { %972 = vrot.lane.b32.xlu1 %v967_v61, %s1793_s23  ;;  %s1253_s23 = sshll.u32 %s337_s28, 4  ;;  %s2166_s23 = int_to_ptr.vmem [resolvable:$true] %s1253_s23 }
 0x6e0   : > { %p1715_p1 = scmp.lt.s32.totalorder %s2166_s23, %s1713_s25 }
 0x757   : > { %v1064_v10 = vpop.xlane.xlu1 %1063 }
 0x758   : > { %1706 = vrcp.f32 %v1064_v10 }
 0x75b   : > { %v1068_v11 = vpop.permute.xlu1 %1067 }
 0x75c   : > { %1546 = vmatpush3.msra.mxu1 %v1068_v11 }
 0x75d   : > { %1629 = vmatprep.subr.bf16.mxu1 %v1788_v3  ;;  %v1630_v3 = vpack.c.bf16 %v1151_v16, %v1150_v15 }
 0x75f   : > { %v973_v12 = vpop.permute.xlu1 %972 }
 0x760   : > { %976 = vst.msk [vmem:[#allocation4] sm:$0xff] %vm975_vm5, %v973_v12 }
 0x762   : > { %v1707_v13 = vpop.eup %1706 }
 0x763   : > { %v1066_v14 = vmul.f32 %v1707_v13, %v1705_v8 }
 0x765   : > { %1548 = vmatmul.mubr.msk.f32.vlgmr.msra.gmra.mrb[12].mxu1 %vm718_vm4, %v1066_v14 }
 0x766   : > { %1554 = vmatprep.mubr.msk.f32.mxu1 %vm1789_vm0, %v1790_v6  ;;  %1632 = vmatpush3.bf16.msk.msra.mxu1 %vm1631_vm8, %v1630_v3 }
 0x838   : > { %v1139_v17 = vpop.f32.mrb[12].mxu1 }
 0x839   : > { %1144 = vrot.lane.b32.xlu1 %v1139_v17, %s1795_s24  ;;  %v1549_v18 = vpop.f32.mrb[13].mxu1  ;;  %s1708_s24 = scalar_lea.vmem %s2166_s23, 128 }
 0x83a   : > { %p1709_p12 = scmp.ne.s32.totalorder %s2166_s23, %s1708_s24  ;;  %p1716_p2 = scmp.lt.s32.totalorder %s1714_s26, %s1708_s24 }
 0x83c   : > { %p1710_p13 = pnand %p1709_p12, %p1887_p4  ;;  %p1717_p3 = por %p1716_p2, %p1715_p1 }
 0x83e   : > { %p1711_p0 = pneg %p1710_p13 }
 0x840   : > { %p1718_p5 = pnand %p1717_p3, %p1711_p0 }
 0x8ab   : > { %v1145_v6 = vpop.permute.xlu1 %1144 }
 0x8ac   : > { %1148 = vst.msk [vmem:[#allocation4] sm:$0xff] %vm1147_vm9, %v1145_v6 }
 0x8b3   : > { %v1149_v19 = vld [vmem:[#allocation4] sm:$0xff] }
 0x8b4   : > { %1555 = vmatmul.mubr.msk.f32.vlgmr.msra.gmra.mrb[14].mxu1 %vm533_vm1, %v1149_v19 }
 0x987   : > { %v1233_v21 = vpop.f32.mrb[14].mxu1 }
 0x988   : > { %v1234_v22 = vadd.f32 %v1342_v20, %v1233_v21  ;;  %v1556_v23 = vpop.f32.mrb[15].mxu1 }
 0x98a   : > { %1237 = vst [vmem:[%s337_s28] sm:$0xff] %v1234_v22 }
 0x98b   : > { %1721 = shalt.err (!%p1718_p5)
}
 0x98c   : > { %s1722_s18 = scalar_lea.hbm %s2164_s16, 128  ;;  %s1726_s28 = scalar_lea.hbm %s2220_s9, 256 }
 0x98d   : > { %p1723_p6 = scmp.ne.s32.totalorder %s2164_s16, %s1722_s18  ;;  %p1727_p10 = scmp.lt.u32.totalorder %s2164_s16, %s2220_s9 }
 0x98e   : > { %p1728_p11 = scmp.lt.u32.totalorder %s1726_s28, %s1722_s18  ;;  %p1730_p13 = scmp.lt.u32.totalorder %s1722_s18, %s2164_s16 }
 0x98f   : > { %p1724_p7 = pnand %p1723_p6, %p1887_p4 }
 0x990   : > { %p1729_p12 = por %p1728_p11, %p1727_p10 }
 0x991   : > { %p1725_p9 = pneg %p1724_p7 }
 0x992   : > { %p1731_p0 = por %p1730_p13, %p1729_p12 }
 0x994   : > { %p1732_p1 = pnand %p1731_p0, %p1725_p9 }
 0x996   : > { %1735 = shalt.err (!%p1732_p1)
}
 0x997   : > { %1633 = dma.vmem_to_hbm [thread:$0]  (%p1887_p4), %s2166_s23, 128, %s2164_s16, %s1239_s20  }
 0x998 PF: > { %p1639_p2 = scmp.ge.s32.totalorder %s1786_s14, 2  ;;  %s1265_s24 = sand.u32 1, %s1766_s30  }
 0x999   : > { %s1266_s12 = scalar_lea.sflag [#allocation6], %s1265_s24 }
 0x99a   : > { %p1636_p3 = pnand %p1639_p2, %p1894_p8 }
 0x99c   : > { %1761 = dma.done.wait (!%p1636_p3), %s1266_s12, 128  }
 0x99d   : > { %1763 = vsyncadd (!%p1636_p3), %s1266_s12, 4294967168  ;;  %s22_s14 = sadd.s32 1, %s1786_s14   ;;  %s2225_s30 = smov %s1770_s10 }
 0x99e   : > { %p19_p5 = scmp.ge.s32.totalorder %s22_s14, 4   ;;  %s2226_s10 = smov %s1774_s11 }
 0x99f   : > { %s2227_s11 = smov %s1900_s22  ;;  %s2228_s12 = smov %s1782_s13 }
 0x9a0   : > { %s2229_s13 = smov %s2231_s17  ;;  %21 = sbr.rel (!%p19_p5) target bundleno = 6 (0x6), region = 96 }
 0x9a7   :  { %1271 = vsyncpa [#allocation6], 1 }
 0x9a8   :  { %1273 = vsyncpa [#allocation6 + $0x1], 1 }

</bundles_post_ra>
